<compile_context>
chip_gen: v7x
topology: tpu7x:2x2x1
jax: 0.10.0
libtpu: 0.0.40
codegen_flags: <defaults>
</compile_context>

<pallas_src>
import jax
import jax.numpy as jnp
from jax.experimental import pallas as pl
from jax.experimental.pallas import tpu as pltpu


def _round_up(x, m):
    return (x + m - 1) // m * m


# --------------------------------------------------------------------- kernel 1
def downblock_conv_kernel(p0_ref, wd_ref, bd_ref, w1_ref, b1_ref, w2_ref, b2_ref,
                          x0_ref, h_ref, stats_ref, pad_ref, im_ref):
    # p0_ref   : (1, Ho*Wo, K0p) bf16  pre-packed im2col patches of the stride-2 conv
    # wd_ref   : (K0p, Cp)       bf16  stride-2 conv weight (zero padded)
    # w1/w2    : (9*Cp, Cp)      bf16  'same' conv weights  (zero padded)
    # bd/b1/b2 : (1, Cp)         f32
    # x0_ref   : (1, Ho*Wo, Cp)  f32   residual branch (down_conv output)
    # h_ref    : (1, Ho*Wo, Cp)  f32   conv2 output (pre-BatchNorm)
    # stats_ref: (1, 2, Cp)      f32   per-sample [sum, sum-of-squares] of h
    # pad_ref  : VMEM (Ho+2, Wo+2, Cp) f32   activation with zero halo
    # im_ref   : VMEM (Ho*Wo, 9*Cp)    bf16  im2col patch matrix for the 'same' convs
    _, HoWo, Cp = h_ref.shape
    Ho, Wo = pad_ref.shape[0] - 2, pad_ref.shape[1] - 2

    # ---- down_conv (stride 2, padding=1): single MXU matmul on pre-packed patches
    x0 = jnp.dot(p0_ref[0], wd_ref[...],
                 preferred_element_type=jnp.float32) + bd_ref[...]
    x0_ref[...] = x0.reshape(1, HoWo, Cp)

    # ---- zero only the 1-wide halo; the interior is fully overwritten each conv
    zrow = jnp.zeros((1, Wo + 2, Cp), jnp.float32)
    zcol = jnp.zeros((Ho + 2, 1, Cp), jnp.float32)
    pad_ref[0:1, :, :] = zrow
    pad_ref[Ho + 1:Ho + 2, :, :] = zrow
    pad_ref[:, 0:1, :] = zcol
    pad_ref[:, Wo + 1:Wo + 2, :] = zcol

    def conv3x3_same(act, w_ref, b):
        # write activation once into the interior of the zero-halo buffer
        pad_ref[1:Ho + 1, 1:Wo + 1, :] = act.reshape(Ho, Wo, Cp)
        # fused im2col: 9 lane-aligned bf16 copies, then a single MXU matmul
        for ki in range(3):
            for kj in range(3):
                t = ki * 3 + kj
                im_ref[:, t * Cp:(t + 1) * Cp] = (
                    pad_ref[ki:ki + Ho, kj:kj + Wo, :]
                    .reshape(HoWo, Cp).astype(jnp.bfloat16))
        return jnp.dot(im_ref[...], w_ref[...],
                       preferred_element_type=jnp.float32) + b

    h = conv3x3_same(jnp.maximum(x0, 0.0), w1_ref, b1_ref[...])     # activation = ReLU
    h = conv3x3_same(jnp.maximum(h, 0.0), w2_ref, b2_ref[...])
    h_ref[...] = h.reshape(1, HoWo, Cp)

    # ---- BatchNorm partial statistics, single pass (sum and sum of squares)
    stats_ref[0:1, 0:1, :] = jnp.sum(h, axis=0, keepdims=True).reshape(1, 1, Cp)
    stats_ref[0:1, 1:2, :] = jnp.sum(h * h, axis=0, keepdims=True).reshape(1, 1, Cp)


# --------------------------------------------------------------------- kernel 2
def bn_residual_kernel(h_ref, x0_ref, scale_ref, shift_ref, out_ref):
    # y = relu( h * (gamma*inv_std) + (beta - mean*gamma*inv_std) + x0 )
    out_ref[...] = jnp.maximum(
        h_ref[...] * scale_ref[...] + shift_ref[...] + x0_ref[...], 0.0)


# --------------------------------------------------------------------- wrapper
def downblock_apply(x_nchw, params, *, lane=128):
    """DownBlock forward as used in EpsNetContext's UNet (stride-2 conv, padding=1).

    x_nchw: (N, Cin, H, W) float32.  Returns (N, Cout, Ho, Wo), Ho = (H + 2 - 3)//2 + 1.
    """
    N, Cin, H, W = x_nchw.shape
    Cout = params["wd"].shape[-1]
    Ho = (H + 2 - 3) // 2 + 1
    Wo = (W + 2 - 3) // 2 + 1
    HoWo = Ho * Wo
    Cp = _round_up(Cout, lane)       # lane-dense channel dim
    K0 = 9 * Cin
    K0p = _round_up(K0, lane)        # lane-dense contraction for the stride-2 conv

    x = jnp.transpose(x_nchw, (0, 2, 3, 1)).astype(jnp.float32)     # NHWC
    xp = jnp.pad(x, ((0, 0), (1, 1), (1, 1), (0, 0)))               # conv padding = 1

    # stride-2 im2col packed in plain JAX (layout plumbing); bf16 at the MXU boundary
    taps = [xp[:, ki:ki + 2 * Ho - 1:2, kj:kj + 2 * Wo - 1:2, :]
            for ki in range(3) for kj in range(3)]
    patches = jnp.concatenate(taps, axis=-1).reshape(N, HoWo, K0)
    patches = jnp.pad(patches, ((0, 0), (0, 0), (0, K0p - K0))).astype(jnp.bfloat16)

    wd = jnp.zeros((K0p, Cp), jnp.float32).at[:K0, :Cout].set(
        params["wd"].reshape(K0, Cout)).astype(jnp.bfloat16)

    def pad_same_w(w):
        wp = jnp.zeros((3, 3, Cp, Cp), jnp.float32).at[:, :, :Cout, :Cout].set(w)
        return wp.reshape(9 * Cp, Cp).astype(jnp.bfloat16)

    def pad_vec(v):
        return jnp.zeros((1, Cp), jnp.float32).at[0, :Cout].set(v)

    w1, w2 = pad_same_w(params["w1"]), pad_same_w(params["w2"])
    bd, b1, b2 = pad_vec(params["bd"]), pad_vec(params["b1"]), pad_vec(params["b2"])
    gamma, beta = pad_vec(params["gamma"]), pad_vec(params["beta"])

    full = lambda shape: pl.BlockSpec(shape, lambda n: (0,) * len(shape))
    row_blk = pl.BlockSpec((1, HoWo, Cp), lambda n: (n, 0, 0))
    cparams = pltpu.CompilerParams(dimension_semantics=("parallel",),
                                   vmem_limit_bytes=32 * 1024 * 1024)

    # ---- phase 1: convs + per-sample BN partial statistics (grid over batch)
    x0_hbm, h_hbm, stats = pl.pallas_call(
        downblock_conv_kernel,
        grid=(N,),
        in_specs=[pl.BlockSpec((1, HoWo, K0p), lambda n: (n, 0, 0)),
                  full((K0p, Cp)), full((1, Cp)),
                  full((9 * Cp, Cp)), full((1, Cp)),
                  full((9 * Cp, Cp)), full((1, Cp))],
        out_specs=[row_blk, row_blk,
                   pl.BlockSpec((1, 2, Cp), lambda n: (n, 0, 0))],
        out_shape=[jax.ShapeDtypeStruct((N, HoWo, Cp), jnp.float32),
                   jax.ShapeDtypeStruct((N, HoWo, Cp), jnp.float32),
                   jax.ShapeDtypeStruct((N, 2, Cp), jnp.float32)],
        scratch_shapes=[pltpu.VMEM((Ho + 2, Wo + 2, Cp), jnp.float32),
                        pltpu.VMEM((HoWo, 9 * Cp), jnp.bfloat16)],
        compiler_params=cparams,
    )(patches, wd, bd, w1, b1, w2, b2)

    # ---- tiny cross-sample reduction in plain JAX (global training-mode BN stats)
    count = float(N * HoWo)
    tot = jnp.sum(stats, axis=0)                               # (2, Cp)
    mean = tot[0:1] / count                                    # (1, Cp)
    var = jnp.maximum(tot[1:2] / count - mean * mean, 0.0)     # biased variance
    inv = jax.lax.rsqrt(var + 1e-5)
    scale = gamma * inv
    shift = beta - mean * scale
    # TODO(synk): BatchNorm running_mean / running_var state updates (training-time
    # side effect of nn.BatchNorm2d) are not modeled.

    # ---- phase 2: normalize + residual + ReLU (grid over batch)
    out = pl.pallas_call(
        bn_residual_kernel,
        grid=(N,),
        in_specs=[row_blk, row_blk, full((1, Cp)), full((1, Cp))],
        out_specs=row_blk,
        out_shape=jax.ShapeDtypeStruct((N, HoWo, Cp), jnp.float32),
        compiler_params=cparams,
    )(h_hbm, x0_hbm, scale, shift)

    out = out[:, :, :Cout].reshape(N, Ho, Wo, Cout)
    return jnp.transpose(out, (0, 3, 1, 2))                    # back to NCHW


# --------------------------------------------------------------------- params / reference
def init_params(key, cin, cout):
    ks = jax.random.split(key, 8)

    def conv_w(k, ci, co):
        return jax.random.normal(k, (3, 3, ci, co), jnp.float32) / jnp.sqrt(9.0 * ci)

    return dict(
        wd=conv_w(ks[0], cin, cout),
        bd=0.1 * jax.random.normal(ks[1], (cout,), jnp.float32),
        w1=conv_w(ks[2], cout, cout),
        b1=0.1 * jax.random.normal(ks[3], (cout,), jnp.float32),
        w2=conv_w(ks[4], cout, cout),
        b2=0.1 * jax.random.normal(ks[5], (cout,), jnp.float32),
        gamma=1.0 + 0.1 * jax.random.normal(ks[6], (cout,), jnp.float32),
        beta=0.1 * jax.random.normal(ks[7], (cout,), jnp.float32),
    )


def reference_forward(x_nchw, p):
    """Pure-JAX reference mirroring the PyTorch DownBlock (training-mode BN), f32 HIGHEST."""
    def conv(h, w, b, stride, padding):
        y = jax.lax.conv_general_dilated(
            h, w, window_strides=(stride, stride), padding=padding,
            dimension_numbers=("NHWC", "HWIO", "NHWC"),
            precision=jax.lax.Precision.HIGHEST)
        return y + b.reshape(1, 1, 1, -1)

    x = jnp.transpose(x_nchw, (0, 2, 3, 1)).astype(jnp.float32)
    x0 = conv(x, p["wd"], p["bd"], 2, [(1, 1), (1, 1)])        # stride-2, padding=1
    h = jax.nn.relu(x0)
    h = conv(h, p["w1"], p["b1"], 1, "SAME")
    h = jax.nn.relu(h)
    h = conv(h, p["w2"], p["b2"], 1, "SAME")
    mean = h.mean((0, 1, 2), keepdims=True)
    var = ((h - mean) ** 2).mean((0, 1, 2), keepdims=True)
    h = (h - mean) / jnp.sqrt(var + 1e-5)
    h = h * p["gamma"].reshape(1, 1, 1, -1) + p["beta"].reshape(1, 1, 1, -1)
    y = jax.nn.relu(h + x0)
    return jnp.transpose(y, (0, 3, 1, 2))


# --------------------------------------------------------------------- main
if __name__ == "__main__":
    key = jax.random.PRNGKey(0)
    kx, kp = jax.random.split(key)
    # First DownBlock of EpsNetContext's UNet: cin = 1 + 3 + 3 = 7 (image + time-emb +
    # ctx-emb), cout = 16, stride-2 conv with padding=1.  Spatial kept small (16x16).
    N, Cin, Cout, H, W = 2, 7, 16, 16, 16

    x = jax.random.normal(kx, (N, Cin, H, W), jnp.float32)
    params = init_params(kp, Cin, Cout)

    out = jax.block_until_ready(downblock_apply(x, params))

    ref = reference_forward(x, params)
    assert out.shape == ref.shape, (out.shape, ref.shape)
    err = float(jnp.max(jnp.abs(out - ref)))
    # bf16 MXU operands with f32 accumulation vs f32-HIGHEST reference
    assert err < 5e-2, f"max abs err {err}"
    print("KERNEL_OK")
</pallas_src>

<mosaic_0001>
module attributes {stable_mosaic.version = 11 : i64} {
  func.func @downblock_conv_kernel(%arg0: i32, %arg1: memref<1x64x128xbf16, #tpu.memory_space<vmem>>, %arg2: memref<128x128xbf16, #tpu.memory_space<vmem>>, %arg3: memref<1x128xf32, #tpu.memory_space<vmem>>, %arg4: memref<1152x128xbf16, #tpu.memory_space<vmem>>, %arg5: memref<1x128xf32, #tpu.memory_space<vmem>>, %arg6: memref<1152x128xbf16, #tpu.memory_space<vmem>>, %arg7: memref<1x128xf32, #tpu.memory_space<vmem>>, %arg8: memref<1x64x128xf32, #tpu.memory_space<vmem>>, %arg9: memref<1x64x128xf32, #tpu.memory_space<vmem>>, %arg10: memref<1x2x128xf32, #tpu.memory_space<vmem>>, %arg11: memref<10x10x128xf32, #tpu.memory_space<vmem>>, %arg12: memref<64x1152xbf16, #tpu.memory_space<vmem>>) attributes {dimension_semantics = [#tpu.dimension_semantics<parallel>], iteration_bounds = array<i64: 2>, scalar_prefetch = 0 : i64, scratch_operands = 2 : i64, tpu.core_type = #tpu.core_type<tc>, window_params = [{transform_indices = @transform_0, window_bounds = array<i64: 1, 64, 128>}, {pipeline_mode = #tpu.pipeline_mode<synchronous>, transform_indices = @transform_1, window_bounds = array<i64: 128, 128>}, {pipeline_mode = #tpu.pipeline_mode<synchronous>, transform_indices = @transform_2, window_bounds = array<i64: 1, 128>}, {pipeline_mode = #tpu.pipeline_mode<synchronous>, transform_indices = @transform_3, window_bounds = array<i64: 1152, 128>}, {pipeline_mode = #tpu.pipeline_mode<synchronous>, transform_indices = @transform_4, window_bounds = array<i64: 1, 128>}, {pipeline_mode = #tpu.pipeline_mode<synchronous>, transform_indices = @transform_5, window_bounds = array<i64: 1152, 128>}, {pipeline_mode = #tpu.pipeline_mode<synchronous>, transform_indices = @transform_6, window_bounds = array<i64: 1, 128>}, {transform_indices = @transform_7, window_bounds = array<i64: 1, 64, 128>}, {transform_indices = @transform_8, window_bounds = array<i64: 1, 64, 128>}, {transform_indices = @transform_9, window_bounds = array<i64: 1, 2, 128>}]} {
    %c0 = arith.constant 0 : index
    %c0_0 = arith.constant 0 : index
    %c0_1 = arith.constant 0 : index
    %0 = vector.load %arg1[%c0, %c0_0, %c0_1] : memref<1x64x128xbf16, #tpu.memory_space<vmem>>, vector<1x64x128xbf16>
    %1 = vector.shape_cast %0 : vector<1x64x128xbf16> to vector<64x128xbf16>
    %c0_2 = arith.constant 0 : index
    %c0_3 = arith.constant 0 : index
    %2 = vector.load %arg2[%c0_2, %c0_3] : memref<128x128xbf16, #tpu.memory_space<vmem>>, vector<128x128xbf16>
    %cst = arith.constant dense<0.000000e+00> : vector<64x128xf32>
    %3 = tpu.matmul %1, %2, %cst {dimension_numbers = #tpu.dot_dimension_numbers<[1], [0], [0], [1], [0, 0, 1, 1], [], []>} : vector<64x128xbf16>, vector<128x128xbf16>, vector<64x128xf32> -> vector<64x128xf32>
    %c0_4 = arith.constant 0 : index
    %c0_5 = arith.constant 0 : index
    %4 = vector.load %arg3[%c0_4, %c0_5] : memref<1x128xf32, #tpu.memory_space<vmem>>, vector<1x128xf32>
    %5 = vector.broadcast %4 : vector<1x128xf32> to vector<64x128xf32>
    %6 = arith.addf %3, %5 : vector<64x128xf32>
    %7 = vector.shape_cast %6 : vector<64x128xf32> to vector<1x64x128xf32>
    %c0_6 = arith.constant 0 : index
    %c0_7 = arith.constant 0 : index
    %c0_8 = arith.constant 0 : index
    %8 = vector.load %arg8[%c0_6, %c0_7, %c0_8] : memref<1x64x128xf32, #tpu.memory_space<vmem>>, vector<1x64x128xf32>
    tpu.vector_store %arg8[%c0_6, %c0_7, %c0_8], %7 {strides = array<i32>} : memref<1x64x128xf32, #tpu.memory_space<vmem>>, vector<1x64x128xf32>,
    %cst_9 = arith.constant 0.000000e+00 : f32
    %9 = vector.broadcast %cst_9 : f32 to vector<1x10x128xf32>
    %cst_10 = arith.constant 0.000000e+00 : f32
    %10 = vector.broadcast %cst_10 : f32 to vector<10x1x128xf32>
    %c0_11 = arith.constant 0 : index
    %c0_12 = arith.constant 0 : index
    %c0_13 = arith.constant 0 : index
    %11 = vector.load %arg11[%c0_11, %c0_12, %c0_13] : memref<10x10x128xf32, #tpu.memory_space<vmem>>, vector<1x10x128xf32>
    tpu.vector_store %arg11[%c0_11, %c0_12, %c0_13], %9 {strides = array<i32>} : memref<10x10x128xf32, #tpu.memory_space<vmem>>, vector<1x10x128xf32>,
    %c9 = arith.constant 9 : index
    %c0_14 = arith.constant 0 : index
    %c0_15 = arith.constant 0 : index
    %12 = vector.load %arg11[%c9, %c0_14, %c0_15] : memref<10x10x128xf32, #tpu.memory_space<vmem>>, vector<1x10x128xf32>
    tpu.vector_store %arg11[%c9, %c0_14, %c0_15], %9 {strides = array<i32>} : memref<10x10x128xf32, #tpu.memory_space<vmem>>, vector<1x10x128xf32>,
    %c0_16 = arith.constant 0 : index
    %c0_17 = arith.constant 0 : index
    %c0_18 = arith.constant 0 : index
    %13 = vector.load %arg11[%c0_16, %c0_17, %c0_18] : memref<10x10x128xf32, #tpu.memory_space<vmem>>, vector<10x1x128xf32>
    tpu.vector_store %arg11[%c0_16, %c0_17, %c0_18], %10 {strides = array<i32>} : memref<10x10x128xf32, #tpu.memory_space<vmem>>, vector<10x1x128xf32>,
    %c0_19 = arith.constant 0 : index
    %c9_20 = arith.constant 9 : index
    %c0_21 = arith.constant 0 : index
    %14 = vector.load %arg11[%c0_19, %c9_20, %c0_21] : memref<10x10x128xf32, #tpu.memory_space<vmem>>, vector<10x1x128xf32>
    tpu.vector_store %arg11[%c0_19, %c9_20, %c0_21], %10 {strides = array<i32>} : memref<10x10x128xf32, #tpu.memory_space<vmem>>, vector<10x1x128xf32>,
    %cst_22 = arith.constant 0.000000e+00 : f32
    %15 = vector.broadcast %cst_22 : f32 to vector<64x128xf32>
    %16 = arith.maximumf %6, %15 : vector<64x128xf32>
    %c0_23 = arith.constant 0 : index
    %c0_24 = arith.constant 0 : index
    %17 = vector.load %arg5[%c0_23, %c0_24] : memref<1x128xf32, #tpu.memory_space<vmem>>, vector<1x128xf32>
    %18 = vector.shape_cast %16 : vector<64x128xf32> to vector<8x8x128xf32>
    %c1 = arith.constant 1 : index
    %c1_25 = arith.constant 1 : index
    %c0_26 = arith.constant 0 : index
    %19 = vector.load %arg11[%c1, %c1_25, %c0_26] : memref<10x10x128xf32, #tpu.memory_space<vmem>>, vector<8x8x128xf32>
    tpu.vector_store %arg11[%c1, %c1_25, %c0_26], %18 {strides = array<i32>} : memref<10x10x128xf32, #tpu.memory_space<vmem>>, vector<8x8x128xf32>,
    %c0_27 = arith.constant 0 : index
    %c0_28 = arith.constant 0 : index
    %c0_29 = arith.constant 0 : index
    %20 = vector.load %arg11[%c0_27, %c0_28, %c0_29] : memref<10x10x128xf32, #tpu.memory_space<vmem>>, vector<8x8x128xf32>
    %21 = vector.shape_cast %20 : vector<8x8x128xf32> to vector<64x128xf32>
    %22 = arith.truncf %21 : vector<64x128xf32> to vector<64x128xbf16>
    %c0_30 = arith.constant 0 : index
    %c0_31 = arith.constant 0 : index
    %23 = vector.load %arg12[%c0_30, %c0_31] : memref<64x1152xbf16, #tpu.memory_space<vmem>>, vector<64x128xbf16>
    tpu.vector_store %arg12[%c0_30, %c0_31], %22 {strides = array<i32>} : memref<64x1152xbf16, #tpu.memory_space<vmem>>, vector<64x128xbf16>,
    %c0_32 = arith.constant 0 : index
    %c1_33 = arith.constant 1 : index
    %c0_34 = arith.constant 0 : index
    %24 = vector.load %arg11[%c0_32, %c1_33, %c0_34] : memref<10x10x128xf32, #tpu.memory_space<vmem>>, vector<8x8x128xf32>
    %25 = vector.shape_cast %24 : vector<8x8x128xf32> to vector<64x128xf32>
    %26 = arith.truncf %25 : vector<64x128xf32> to vector<64x128xbf16>
    %c0_35 = arith.constant 0 : index
    %c128 = arith.constant 128 : index
    %27 = vector.load %arg12[%c0_35, %c128] : memref<64x1152xbf16, #tpu.memory_space<vmem>>, vector<64x128xbf16>
    tpu.vector_store %arg12[%c0_35, %c128], %26 {strides = array<i32>} : memref<64x1152xbf16, #tpu.memory_space<vmem>>, vector<64x128xbf16>,
    %c0_36 = arith.constant 0 : index
    %c2 = arith.constant 2 : index
    %c0_37 = arith.constant 0 : index
    %28 = vector.load %arg11[%c0_36, %c2, %c0_37] : memref<10x10x128xf32, #tpu.memory_space<vmem>>, vector<8x8x128xf32>
    %29 = vector.shape_cast %28 : vector<8x8x128xf32> to vector<64x128xf32>
    %30 = arith.truncf %29 : vector<64x128xf32> to vector<64x128xbf16>
    %c0_38 = arith.constant 0 : index
    %c256 = arith.constant 256 : index
    %31 = vector.load %arg12[%c0_38, %c256] : memref<64x1152xbf16, #tpu.memory_space<vmem>>, vector<64x128xbf16>
    tpu.vector_store %arg12[%c0_38, %c256], %30 {strides = array<i32>} : memref<64x1152xbf16, #tpu.memory_space<vmem>>, vector<64x128xbf16>,
    %c1_39 = arith.constant 1 : index
    %c0_40 = arith.constant 0 : index
    %c0_41 = arith.constant 0 : index
    %32 = vector.load %arg11[%c1_39, %c0_40, %c0_41] : memref<10x10x128xf32, #tpu.memory_space<vmem>>, vector<8x8x128xf32>
    %33 = vector.shape_cast %32 : vector<8x8x128xf32> to vector<64x128xf32>
    %34 = arith.truncf %33 : vector<64x128xf32> to vector<64x128xbf16>
    %c0_42 = arith.constant 0 : index
    %c384 = arith.constant 384 : index
    %35 = vector.load %arg12[%c0_42, %c384] : memref<64x1152xbf16, #tpu.memory_space<vmem>>, vector<64x128xbf16>
    tpu.vector_store %arg12[%c0_42, %c384], %34 {strides = array<i32>} : memref<64x1152xbf16, #tpu.memory_space<vmem>>, vector<64x128xbf16>,
    %c1_43 = arith.constant 1 : index
    %c1_44 = arith.constant 1 : index
    %c0_45 = arith.constant 0 : index
    %36 = vector.load %arg11[%c1_43, %c1_44, %c0_45] : memref<10x10x128xf32, #tpu.memory_space<vmem>>, vector<8x8x128xf32>
    %37 = vector.shape_cast %36 : vector<8x8x128xf32> to vector<64x128xf32>
    %38 = arith.truncf %37 : vector<64x128xf32> to vector<64x128xbf16>
    %c0_46 = arith.constant 0 : index
    %c512 = arith.constant 512 : index
    %39 = vector.load %arg12[%c0_46, %c512] : memref<64x1152xbf16, #tpu.memory_space<vmem>>, vector<64x128xbf16>
    tpu.vector_store %arg12[%c0_46, %c512], %38 {strides = array<i32>} : memref<64x1152xbf16, #tpu.memory_space<vmem>>, vector<64x128xbf16>,
    %c1_47 = arith.constant 1 : index
    %c2_48 = arith.constant 2 : index
    %c0_49 = arith.constant 0 : index
    %40 = vector.load %arg11[%c1_47, %c2_48, %c0_49] : memref<10x10x128xf32, #tpu.memory_space<vmem>>, vector<8x8x128xf32>
    %41 = vector.shape_cast %40 : vector<8x8x128xf32> to vector<64x128xf32>
    %42 = arith.truncf %41 : vector<64x128xf32> to vector<64x128xbf16>
    %c0_50 = arith.constant 0 : index
    %c640 = arith.constant 640 : index
    %43 = vector.load %arg12[%c0_50, %c640] : memref<64x1152xbf16, #tpu.memory_space<vmem>>, vector<64x128xbf16>
    tpu.vector_store %arg12[%c0_50, %c640], %42 {strides = array<i32>} : memref<64x1152xbf16, #tpu.memory_space<vmem>>, vector<64x128xbf16>,
    %c2_51 = arith.constant 2 : index
    %c0_52 = arith.constant 0 : index
    %c0_53 = arith.constant 0 : index
    %44 = vector.load %arg11[%c2_51, %c0_52, %c0_53] : memref<10x10x128xf32, #tpu.memory_space<vmem>>, vector<8x8x128xf32>
    %45 = vector.shape_cast %44 : vector<8x8x128xf32> to vector<64x128xf32>
    %46 = arith.truncf %45 : vector<64x128xf32> to vector<64x128xbf16>
    %c0_54 = arith.constant 0 : index
    %c768 = arith.constant 768 : index
    %47 = vector.load %arg12[%c0_54, %c768] : memref<64x1152xbf16, #tpu.memory_space<vmem>>, vector<64x128xbf16>
    tpu.vector_store %arg12[%c0_54, %c768], %46 {strides = array<i32>} : memref<64x1152xbf16, #tpu.memory_space<vmem>>, vector<64x128xbf16>,
    %c2_55 = arith.constant 2 : index
    %c1_56 = arith.constant 1 : index
    %c0_57 = arith.constant 0 : index
    %48 = vector.load %arg11[%c2_55, %c1_56, %c0_57] : memref<10x10x128xf32, #tpu.memory_space<vmem>>, vector<8x8x128xf32>
    %49 = vector.shape_cast %48 : vector<8x8x128xf32> to vector<64x128xf32>
    %50 = arith.truncf %49 : vector<64x128xf32> to vector<64x128xbf16>
    %c0_58 = arith.constant 0 : index
    %c896 = arith.constant 896 : index
    %51 = vector.load %arg12[%c0_58, %c896] : memref<64x1152xbf16, #tpu.memory_space<vmem>>, vector<64x128xbf16>
    tpu.vector_store %arg12[%c0_58, %c896], %50 {strides = array<i32>} : memref<64x1152xbf16, #tpu.memory_space<vmem>>, vector<64x128xbf16>,
    %c2_59 = arith.constant 2 : index
    %c2_60 = arith.constant 2 : index
    %c0_61 = arith.constant 0 : index
    %52 = vector.load %arg11[%c2_59, %c2_60, %c0_61] : memref<10x10x128xf32, #tpu.memory_space<vmem>>, vector<8x8x128xf32>
    %53 = vector.shape_cast %52 : vector<8x8x128xf32> to vector<64x128xf32>
    %54 = arith.truncf %53 : vector<64x128xf32> to vector<64x128xbf16>
    %c0_62 = arith.constant 0 : index
    %c1024 = arith.constant 1024 : index
    %55 = vector.load %arg12[%c0_62, %c1024] : memref<64x1152xbf16, #tpu.memory_space<vmem>>, vector<64x128xbf16>
    tpu.vector_store %arg12[%c0_62, %c1024], %54 {strides = array<i32>} : memref<64x1152xbf16, #tpu.memory_space<vmem>>, vector<64x128xbf16>,
    %c0_63 = arith.constant 0 : index
    %c0_64 = arith.constant 0 : index
    %56 = vector.load %arg12[%c0_63, %c0_64] : memref<64x1152xbf16, #tpu.memory_space<vmem>>, vector<64x1152xbf16>
    %c0_65 = arith.constant 0 : index
    %c0_66 = arith.constant 0 : index
    %57 = vector.load %arg4[%c0_65, %c0_66] : memref<1152x128xbf16, #tpu.memory_space<vmem>>, vector<1152x128xbf16>
    %cst_67 = arith.constant dense<0.000000e+00> : vector<64x128xf32>
    %58 = tpu.matmul %56, %57, %cst_67 {dimension_numbers = #tpu.dot_dimension_numbers<[1], [0], [0], [1], [0, 0, 1, 1], [], []>} : vector<64x1152xbf16>, vector<1152x128xbf16>, vector<64x128xf32> -> vector<64x128xf32>
    %59 = vector.broadcast %17 : vector<1x128xf32> to vector<64x128xf32>
    %60 = arith.addf %58, %59 : vector<64x128xf32>
    %cst_68 = arith.constant 0.000000e+00 : f32
    %61 = vector.broadcast %cst_68 : f32 to vector<64x128xf32>
    %62 = arith.maximumf %60, %61 : vector<64x128xf32>
    %c0_69 = arith.constant 0 : index
    %c0_70 = arith.constant 0 : index
    %63 = vector.load %arg7[%c0_69, %c0_70] : memref<1x128xf32, #tpu.memory_space<vmem>>, vector<1x128xf32>
    %64 = vector.shape_cast %62 : vector<64x128xf32> to vector<8x8x128xf32>
    %c1_71 = arith.constant 1 : index
    %c1_72 = arith.constant 1 : index
    %c0_73 = arith.constant 0 : index
    %65 = vector.load %arg11[%c1_71, %c1_72, %c0_73] : memref<10x10x128xf32, #tpu.memory_space<vmem>>, vector<8x8x128xf32>
    tpu.vector_store %arg11[%c1_71, %c1_72, %c0_73], %64 {strides = array<i32>} : memref<10x10x128xf32, #tpu.memory_space<vmem>>, vector<8x8x128xf32>,
    %c0_74 = arith.constant 0 : index
    %c0_75 = arith.constant 0 : index
    %c0_76 = arith.constant 0 : index
    %66 = vector.load %arg11[%c0_74, %c0_75, %c0_76] : memref<10x10x128xf32, #tpu.memory_space<vmem>>, vector<8x8x128xf32>
    %67 = vector.shape_cast %66 : vector<8x8x128xf32> to vector<64x128xf32>
    %68 = arith.truncf %67 : vector<64x128xf32> to vector<64x128xbf16>
    %c0_77 = arith.constant 0 : index
    %c0_78 = arith.constant 0 : index
    %69 = vector.load %arg12[%c0_77, %c0_78] : memref<64x1152xbf16, #tpu.memory_space<vmem>>, vector<64x128xbf16>
    tpu.vector_store %arg12[%c0_77, %c0_78], %68 {strides = array<i32>} : memref<64x1152xbf16, #tpu.memory_space<vmem>>, vector<64x128xbf16>,
    %c0_79 = arith.constant 0 : index
    %c1_80 = arith.constant 1 : index
    %c0_81 = arith.constant 0 : index
    %70 = vector.load %arg11[%c0_79, %c1_80, %c0_81] : memref<10x10x128xf32, #tpu.memory_space<vmem>>, vector<8x8x128xf32>
    %71 = vector.shape_cast %70 : vector<8x8x128xf32> to vector<64x128xf32>
    %72 = arith.truncf %71 : vector<64x128xf32> to vector<64x128xbf16>
    %c0_82 = arith.constant 0 : index
    %c128_83 = arith.constant 128 : index
    %73 = vector.load %arg12[%c0_82, %c128_83] : memref<64x1152xbf16, #tpu.memory_space<vmem>>, vector<64x128xbf16>
    tpu.vector_store %arg12[%c0_82, %c128_83], %72 {strides = array<i32>} : memref<64x1152xbf16, #tpu.memory_space<vmem>>, vector<64x128xbf16>,
    %c0_84 = arith.constant 0 : index
    %c2_85 = arith.constant 2 : index
    %c0_86 = arith.constant 0 : index
    %74 = vector.load %arg11[%c0_84, %c2_85, %c0_86] : memref<10x10x128xf32, #tpu.memory_space<vmem>>, vector<8x8x128xf32>
    %75 = vector.shape_cast %74 : vector<8x8x128xf32> to vector<64x128xf32>
    %76 = arith.truncf %75 : vector<64x128xf32> to vector<64x128xbf16>
    %c0_87 = arith.constant 0 : index
    %c256_88 = arith.constant 256 : index
    %77 = vector.load %arg12[%c0_87, %c256_88] : memref<64x1152xbf16, #tpu.memory_space<vmem>>, vector<64x128xbf16>
    tpu.vector_store %arg12[%c0_87, %c256_88], %76 {strides = array<i32>} : memref<64x1152xbf16, #tpu.memory_space<vmem>>, vector<64x128xbf16>,
    %c1_89 = arith.constant 1 : index
    %c0_90 = arith.constant 0 : index
    %c0_91 = arith.constant 0 : index
    %78 = vector.load %arg11[%c1_89, %c0_90, %c0_91] : memref<10x10x128xf32, #tpu.memory_space<vmem>>, vector<8x8x128xf32>
    %79 = vector.shape_cast %78 : vector<8x8x128xf32> to vector<64x128xf32>
    %80 = arith.truncf %79 : vector<64x128xf32> to vector<64x128xbf16>
    %c0_92 = arith.constant 0 : index
    %c384_93 = arith.constant 384 : index
    %81 = vector.load %arg12[%c0_92, %c384_93] : memref<64x1152xbf16, #tpu.memory_space<vmem>>, vector<64x128xbf16>
    tpu.vector_store %arg12[%c0_92, %c384_93], %80 {strides = array<i32>} : memref<64x1152xbf16, #tpu.memory_space<vmem>>, vector<64x128xbf16>,
    %c1_94 = arith.constant 1 : index
    %c1_95 = arith.constant 1 : index
    %c0_96 = arith.constant 0 : index
    %82 = vector.load %arg11[%c1_94, %c1_95, %c0_96] : memref<10x10x128xf32, #tpu.memory_space<vmem>>, vector<8x8x128xf32>
    %83 = vector.shape_cast %82 : vector<8x8x128xf32> to vector<64x128xf32>
    %84 = arith.truncf %83 : vector<64x128xf32> to vector<64x128xbf16>
    %c0_97 = arith.constant 0 : index
    %c512_98 = arith.constant 512 : index
    %85 = vector.load %arg12[%c0_97, %c512_98] : memref<64x1152xbf16, #tpu.memory_space<vmem>>, vector<64x128xbf16>
    tpu.vector_store %arg12[%c0_97, %c512_98], %84 {strides = array<i32>} : memref<64x1152xbf16, #tpu.memory_space<vmem>>, vector<64x128xbf16>,
    %c1_99 = arith.constant 1 : index
    %c2_100 = arith.constant 2 : index
    %c0_101 = arith.constant 0 : index
    %86 = vector.load %arg11[%c1_99, %c2_100, %c0_101] : memref<10x10x128xf32, #tpu.memory_space<vmem>>, vector<8x8x128xf32>
    %87 = vector.shape_cast %86 : vector<8x8x128xf32> to vector<64x128xf32>
    %88 = arith.truncf %87 : vector<64x128xf32> to vector<64x128xbf16>
    %c0_102 = arith.constant 0 : index
    %c640_103 = arith.constant 640 : index
    %89 = vector.load %arg12[%c0_102, %c640_103] : memref<64x1152xbf16, #tpu.memory_space<vmem>>, vector<64x128xbf16>
    tpu.vector_store %arg12[%c0_102, %c640_103], %88 {strides = array<i32>} : memref<64x1152xbf16, #tpu.memory_space<vmem>>, vector<64x128xbf16>,
    %c2_104 = arith.constant 2 : index
    %c0_105 = arith.constant 0 : index
    %c0_106 = arith.constant 0 : index
    %90 = vector.load %arg11[%c2_104, %c0_105, %c0_106] : memref<10x10x128xf32, #tpu.memory_space<vmem>>, vector<8x8x128xf32>
    %91 = vector.shape_cast %90 : vector<8x8x128xf32> to vector<64x128xf32>
    %92 = arith.truncf %91 : vector<64x128xf32> to vector<64x128xbf16>
    %c0_107 = arith.constant 0 : index
    %c768_108 = arith.constant 768 : index
    %93 = vector.load %arg12[%c0_107, %c768_108] : memref<64x1152xbf16, #tpu.memory_space<vmem>>, vector<64x128xbf16>
    tpu.vector_store %arg12[%c0_107, %c768_108], %92 {strides = array<i32>} : memref<64x1152xbf16, #tpu.memory_space<vmem>>, vector<64x128xbf16>,
    %c2_109 = arith.constant 2 : index
    %c1_110 = arith.constant 1 : index
    %c0_111 = arith.constant 0 : index
    %94 = vector.load %arg11[%c2_109, %c1_110, %c0_111] : memref<10x10x128xf32, #tpu.memory_space<vmem>>, vector<8x8x128xf32>
    %95 = vector.shape_cast %94 : vector<8x8x128xf32> to vector<64x128xf32>
    %96 = arith.truncf %95 : vector<64x128xf32> to vector<64x128xbf16>
    %c0_112 = arith.constant 0 : index
    %c896_113 = arith.constant 896 : index
    %97 = vector.load %arg12[%c0_112, %c896_113] : memref<64x1152xbf16, #tpu.memory_space<vmem>>, vector<64x128xbf16>
    tpu.vector_store %arg12[%c0_112, %c896_113], %96 {strides = array<i32>} : memref<64x1152xbf16, #tpu.memory_space<vmem>>, vector<64x128xbf16>,
    %c2_114 = arith.constant 2 : index
    %c2_115 = arith.constant 2 : index
    %c0_116 = arith.constant 0 : index
    %98 = vector.load %arg11[%c2_114, %c2_115, %c0_116] : memref<10x10x128xf32, #tpu.memory_space<vmem>>, vector<8x8x128xf32>
    %99 = vector.shape_cast %98 : vector<8x8x128xf32> to vector<64x128xf32>
    %100 = arith.truncf %99 : vector<64x128xf32> to vector<64x128xbf16>
    %c0_117 = arith.constant 0 : index
    %c1024_118 = arith.constant 1024 : index
    %101 = vector.load %arg12[%c0_117, %c1024_118] : memref<64x1152xbf16, #tpu.memory_space<vmem>>, vector<64x128xbf16>
    tpu.vector_store %arg12[%c0_117, %c1024_118], %100 {strides = array<i32>} : memref<64x1152xbf16, #tpu.memory_space<vmem>>, vector<64x128xbf16>,
    %c0_119 = arith.constant 0 : index
    %c0_120 = arith.constant 0 : index
    %102 = vector.load %arg12[%c0_119, %c0_120] : memref<64x1152xbf16, #tpu.memory_space<vmem>>, vector<64x1152xbf16>
    %c0_121 = arith.constant 0 : index
    %c0_122 = arith.constant 0 : index
    %103 = vector.load %arg6[%c0_121, %c0_122] : memref<1152x128xbf16, #tpu.memory_space<vmem>>, vector<1152x128xbf16>
    %cst_123 = arith.constant dense<0.000000e+00> : vector<64x128xf32>
    %104 = tpu.matmul %102, %103, %cst_123 {dimension_numbers = #tpu.dot_dimension_numbers<[1], [0], [0], [1], [0, 0, 1, 1], [], []>} : vector<64x1152xbf16>, vector<1152x128xbf16>, vector<64x128xf32> -> vector<64x128xf32>
    %105 = vector.broadcast %63 : vector<1x128xf32> to vector<64x128xf32>
    %106 = arith.addf %104, %105 : vector<64x128xf32>
    %107 = vector.shape_cast %106 : vector<64x128xf32> to vector<1x64x128xf32>
    %c0_124 = arith.constant 0 : index
    %c0_125 = arith.constant 0 : index
    %c0_126 = arith.constant 0 : index
    %108 = vector.load %arg9[%c0_124, %c0_125, %c0_126] : memref<1x64x128xf32, #tpu.memory_space<vmem>>, vector<1x64x128xf32>
    tpu.vector_store %arg9[%c0_124, %c0_125, %c0_126], %107 {strides = array<i32>} : memref<1x64x128xf32, #tpu.memory_space<vmem>>, vector<1x64x128xf32>,
    %cst_127 = arith.constant dense<0.000000e+00> : vector<128xf32>
    %109 = vector.multi_reduction <add>, %106, %cst_127 [0] : vector<64x128xf32> to vector<128xf32>
    %110 = vector.shape_cast %109 : vector<128xf32> to vector<1x128xf32>
    %111 = vector.shape_cast %110 : vector<1x128xf32> to vector<1x1x128xf32>
    %c0_128 = arith.constant 0 : index
    %c0_129 = arith.constant 0 : index
    %c0_130 = arith.constant 0 : index
    %112 = vector.load %arg10[%c0_128, %c0_129, %c0_130] : memref<1x2x128xf32, #tpu.memory_space<vmem>>, vector<1x1x128xf32>
    tpu.vector_store %arg10[%c0_128, %c0_129, %c0_130], %111 {strides = array<i32>} : memref<1x2x128xf32, #tpu.memory_space<vmem>>, vector<1x1x128xf32>,
    %113 = arith.mulf %106, %106 : vector<64x128xf32>
    %cst_131 = arith.constant dense<0.000000e+00> : vector<128xf32>
    %114 = vector.multi_reduction <add>, %113, %cst_131 [0] : vector<64x128xf32> to vector<128xf32>
    %115 = vector.shape_cast %114 : vector<128xf32> to vector<1x128xf32>
    %116 = vector.shape_cast %115 : vector<1x128xf32> to vector<1x1x128xf32>
    %c0_132 = arith.constant 0 : index
    %c1_133 = arith.constant 1 : index
    %c0_134 = arith.constant 0 : index
    %117 = vector.load %arg10[%c0_132, %c1_133, %c0_134] : memref<1x2x128xf32, #tpu.memory_space<vmem>>, vector<1x1x128xf32>
    tpu.vector_store %arg10[%c0_132, %c1_133, %c0_134], %116 {strides = array<i32>} : memref<1x2x128xf32, #tpu.memory_space<vmem>>, vector<1x1x128xf32>,
    return
  }
  func.func @transform_0(%arg0: i32) -> (i32, i32, i32) {
    %c0_i32 = arith.constant 0 : i32
    %c0_i32_0 = arith.constant 0 : i32
    %c0_i32_1 = arith.constant 0 : i32
    return %arg0, %c0_i32, %c0_i32_0 : i32, i32, i32
  }
  func.func @transform_1(%arg0: i32) -> (i32, i32) {
    %c0_i32 = arith.constant 0 : i32
    %c0_i32_0 = arith.constant 0 : i32
    %c0_i32_1 = arith.constant 0 : i32
    return %c0_i32, %c0_i32_0 : i32, i32
  }
  func.func @transform_2(%arg0: i32) -> (i32, i32) {
    %c0_i32 = arith.constant 0 : i32
    %c0_i32_0 = arith.constant 0 : i32
    %c0_i32_1 = arith.constant 0 : i32
    return %c0_i32, %c0_i32_0 : i32, i32
  }
  func.func @transform_3(%arg0: i32) -> (i32, i32) {
    %c0_i32 = arith.constant 0 : i32
    %c0_i32_0 = arith.constant 0 : i32
    %c0_i32_1 = arith.constant 0 : i32
    return %c0_i32, %c0_i32_0 : i32, i32
  }
  func.func @transform_4(%arg0: i32) -> (i32, i32) {
    %c0_i32 = arith.constant 0 : i32
    %c0_i32_0 = arith.constant 0 : i32
    %c0_i32_1 = arith.constant 0 : i32
    return %c0_i32, %c0_i32_0 : i32, i32
  }
  func.func @transform_5(%arg0: i32) -> (i32, i32) {
    %c0_i32 = arith.constant 0 : i32
    %c0_i32_0 = arith.constant 0 : i32
    %c0_i32_1 = arith.constant 0 : i32
    return %c0_i32, %c0_i32_0 : i32, i32
  }
  func.func @transform_6(%arg0: i32) -> (i32, i32) {
    %c0_i32 = arith.constant 0 : i32
    %c0_i32_0 = arith.constant 0 : i32
    %c0_i32_1 = arith.constant 0 : i32
    return %c0_i32, %c0_i32_0 : i32, i32
  }
  func.func @transform_7(%arg0: i32) -> (i32, i32, i32) {
    %c0_i32 = arith.constant 0 : i32
    %c0_i32_0 = arith.constant 0 : i32
    %c0_i32_1 = arith.constant 0 : i32
    return %arg0, %c0_i32, %c0_i32_0 : i32, i32, i32
  }
  func.func @transform_8(%arg0: i32) -> (i32, i32, i32) {
    %c0_i32 = arith.constant 0 : i32
    %c0_i32_0 = arith.constant 0 : i32
    %c0_i32_1 = arith.constant 0 : i32
    return %arg0, %c0_i32, %c0_i32_0 : i32, i32, i32
  }
  func.func @transform_9(%arg0: i32) -> (i32, i32, i32) {
    %c0_i32 = arith.constant 0 : i32
    %c0_i32_0 = arith.constant 0 : i32
    %c0_i32_1 = arith.constant 0 : i32
    return %arg0, %c0_i32, %c0_i32_0 : i32, i32, i32
  }
}

</mosaic_0001>

<bundles_post_ra>
// kernel: tpu_custom_call.1
= control target key start
LH: loop header
LB: loop body
LE: loop exit
PB: predicated region body
PF: predicated region fallthrough
CT: control target
= control target key end

     0   :  { %s4859_s0 = inlined_call_operand.hbm [shape: bf16[2,64,128], index: 0, kind: input, shape index: {}]   ;;  %s4860_s1 = inlined_call_operand.hbm [shape: bf16[128,128], index: 1, kind: input, shape index: {}]   ;;  %s4861_s2 = inlined_call_operand.vmem [shape: f32[1,128], index: 2, kind: input, shape index: {}]   ;;  %s4862_s3 = inlined_call_operand.hbm [shape: bf16[1152,128], index: 3, kind: input, shape index: {}]   ;;  %s4863_s4 = inlined_call_operand.vmem [shape: f32[1,128], index: 4, kind: input, shape index: {}]   ;;  %s4864_s5 = inlined_call_operand.hbm [shape: bf16[1152,128], index: 5, kind: input, shape index: {}]   ;;  %s4865_s6 = inlined_call_operand.vmem [shape: f32[1,128], index: 6, kind: input, shape index: {}]   ;;  %s4866_s7 = inlined_call_operand.hbm [shape: f32[2,64,128], index: 7, kind: output, shape index: {0}]   ;;  %s4867_s8 = inlined_call_operand.hbm [shape: f32[2,64,128], index: 8, kind: output, shape index: {1}]   ;;  %s4868_s9 = inlined_call_operand.hbm [shape: f32[2,2,128], index: 9, kind: output, shape index: {2}]  }
   0x1   :  { %4876 = sst [smem:[#allocation23_spill]] %s4868_s9 }
   0x2   :  { %15 = vsyncpa [#allocation5], 0 }
   0x3   :  { %17 = vsyncpa [#allocation5 + $0x1], 0 }
   0x4   :  { %18 = vsyncpa [#allocation8], 0 }
   0x5   :  { %19 = vsyncpa [#allocation11], 0 }
   0x6   :  { %20 = vsyncpa [#allocation6], 0 }
   0x7   :  { %22 = vsyncpa [#allocation6 + $0x1], 0 }
   0x8   :  { %23 = vsyncpa [#allocation14], 0 }
   0x9   :  { %25 = vsyncpa [#allocation14 + $0x1], 0  ;;  %s4278_s30 = smov 0   ;;  %s4280_s10 = smov 0  }
   0xa   :  { %s4282_s11 = smov 0   ;;  %s4284_s12 = smov 0  }
   0xb LB: > { %4877 = sst [smem:[#allocation21_spill]] %s4202_s30  ;;  %s4299_s13 = sadd.s32 4294967295, %s4214_s12   ;;  %s4214_s12 = sphi %s4284_s12, %s4902_s12   ;;  %s4210_s11 = sphi %s4282_s11, %s4901_s11   ;;  %s4206_s10 = sphi %s4280_s10, %s4900_s10   ;;  %s4202_s30 = sphi %s4278_s30, %s4899_s30  }
   0xc   : > { %s4870_s14 = sadd.s32 4294967294, %s4214_s12   ;;  %p51_p0 = scmp.ne.s32.totalorder %s4206_s10, %s4202_s30 }
   0xd   : > { %p4869_p1 = scmp.eq.s32.totalorder %s4299_s13, 0  ;;  %p207_p3 = scmp.eq.s32.totalorder %s4870_s14, 1 }
   0xe   : > { %p3086_p5 = scmp.ge.s32.totalorder %s4214_s12, 1  ;;  %p266_p7 = scmp.lt.s32.totalorder %s4214_s12, 3 }
   0xf   : > { %p4310_p4 = por %p4869_p1, %p51_p0  ;;  %p4315_p6 = por %p207_p3, %p51_p0 }
  0x10   : > { %p4320_p8 = pnand %p3086_p5, %p266_p7  ;;  %s4216_s18 = smov [#allocation7]  }
  0x11   : > { %s4878_s15 = scalar_select %p4310_p4, 1, 0 }
  0x12   : > { %s4879_s16 = scalar_select %p4315_p6, 1, 0 }
  0x13   : > { %s4881_s17 = scalar_select %p4320_p8, 1, 0 }
  0x14   : > { %4880 = sst [smem:[#allocation22_spill]] %s4879_s16  ;;  %s278_s19 = sshll.u32 %s4216_s18, 4  ;;  %s4324_s19 = int_to_ptr.vmem [resolvable:$true] %s278_s19 }
  0x15   : > { %p3738_p9 = pneg %p4320_p8  ;;  %s4217_s21 = smov [#allocation9]  }
  0x16   : > { %s294_s22 = sshll.u32 %s4217_s21, 4  ;;  %s4218_s23 = smov [#allocation10]   ;;  %s4335_s22 = int_to_ptr.vmem [resolvable:$true] %s294_s22 }
  0x17   : > { %p4331_p11 = pnand %p3738_p9, %p4869_p1  ;;  %s4337_s24 = sshll.u32 %s4218_s23, 4  ;;  %s311_s24 = int_to_ptr.vmem [resolvable:$true] %s4337_s24 }
  0x18   : > { %s3966_s27 = scalar_lea.hbm %s4860_s1, 1024 }
  0x19   : > { %p3967_p12 = scmp.ne.s32.totalorder %s4860_s1, %s3966_s27  ;;  %p4347_p13 = pneg %p4331_p11 }
  0x1a   : > { %p3973_p5 = scmp.lt.u32.totalorder %s3966_s27, %s4860_s1 }
  0x1b   : > { %p3969_p0 = pnand %p4347_p13, %p3967_p12 }
  0x1d   : > { %p3970_p3 = pneg %p3969_p0 }
  0x1f   : > { %p3975_p7 = pnand %p3973_p5, %p3970_p3 }
  0x21   : > { %3978 = shalt.err (!%p3975_p7)
}
  0x22   : > { %s3979_s25 = scalar_lea.vmem %s4324_s19, 1024  ;;  %p3987_p2 = scmp.lt.s32.totalorder %s4324_s19, %s4324_s19 }
  0x23   : > { %p3980_p9 = scmp.ne.s32.totalorder %s4324_s19, %s3979_s25  ;;  %p3988_p6 = scmp.lt.s32.totalorder %s3979_s25, %s3979_s25 }
  0x25   : > { %p3982_p10 = pnand %p3980_p9, %p4347_p13  ;;  %p3989_p12 = por %p3988_p6, %p3987_p2 }
  0x27   : > { %p3983_p1 = pneg %p3982_p10 }
  0x29   : > { %p3990_p0 = pnand %p3989_p12, %p3983_p1 }
  0x2b   : > { %3993 = shalt.err (!%p3990_p0)
}
  0x2c   : > { %s4219_s26 = smov 64   ;;  %s4220_s27 = smov 4  }
  0x2d   : > { %3741 = dma.hbm_to_vmem [thread:$0]  (!%p4331_p11), %s4860_s1, 1024, %s4324_s19, [#allocation8], %s4219_s26, %s4219_s26, %s4220_s27  }
  0x2e   : > { %s3994_s25 = scalar_lea.hbm %s4862_s3, 9216 }
  0x2f   : > { %p3995_p1 = scmp.ne.s32.totalorder %s4862_s3, %s3994_s25  ;;  %p4001_p10 = scmp.lt.u32.totalorder %s3994_s25, %s4862_s3 }
  0x31   : > { %p3997_p2 = pnand %p3995_p1, %p4347_p13 }
  0x33   : > { %p3998_p6 = pneg %p3997_p2 }
  0x35   : > { %p4003_p3 = pnand %p4001_p10, %p3998_p6 }
  0x37   : > { %4006 = shalt.err (!%p4003_p3)
}
  0x38   : > { %s4007_s19 = scalar_lea.vmem %s4335_s22, 9216  ;;  %p4015_p12 = scmp.lt.s32.totalorder %s4335_s22, %s4335_s22 }
  0x39   : > { %p4008_p5 = scmp.ne.s32.totalorder %s4335_s22, %s4007_s19  ;;  %p4016_p0 = scmp.lt.s32.totalorder %s4007_s19, %s4007_s19 }
  0x3b   : > { %p4010_p7 = pnand %p4008_p5, %p4347_p13  ;;  %p4017_p1 = por %p4016_p0, %p4015_p12 }
  0x3d   : > { %p4011_p9 = pneg %p4010_p7 }
  0x3f   : > { %p4018_p2 = pnand %p4017_p1, %p4011_p9 }
  0x41   : > { %4021 = shalt.err (!%p4018_p2)
}
  0x42   : > { %3744 = dma.hbm_to_vmem [thread:$0]  (!%p4331_p11), %s4862_s3, 9216, %s4335_s22, [#allocation8], %s4219_s26, %s4219_s26, %s4220_s27  }
  0x43   : > { %s4022_s28 = scalar_lea.hbm %s4864_s5, 9216 }
  0x44   : > { %p4023_p6 = scmp.ne.s32.totalorder %s4864_s5, %s4022_s28  ;;  %p4029_p5 = scmp.lt.u32.totalorder %s4022_s28, %s4864_s5 }
  0x46   : > { %p4025_p10 = pnand %p4023_p6, %p4347_p13 }
  0x48   : > { %p4026_p3 = pneg %p4025_p10 }
  0x4a   : > { %p4031_p7 = pnand %p4029_p5, %p4026_p3 }
  0x4c   : > { %4034 = shalt.err (!%p4031_p7)
}
  0x4d   : > { %s4035_s19 = scalar_lea.vmem %s311_s24, 9216  ;;  %p4043_p1 = scmp.lt.s32.totalorder %s311_s24, %s311_s24 }
  0x4e   : > { %p4036_p9 = scmp.ne.s32.totalorder %s311_s24, %s4035_s19  ;;  %p4044_p2 = scmp.lt.s32.totalorder %s4035_s19, %s4035_s19 }
  0x50   : > { %p4038_p12 = pnand %p4036_p9, %p4347_p13  ;;  %p4045_p4 = por %p4044_p2, %p4043_p1 }
  0x52   : > { %p4039_p0 = pneg %p4038_p12 }
  0x54   : > { %p4046_p8 = pnand %p4045_p4, %p4039_p0 }
  0x56   : > { %4049 = shalt.err (!%p4046_p8)
}
  0x57   : > { %3747 = dma.hbm_to_vmem [thread:$0]  (!%p4331_p11), %s4864_s5, 9216, %s311_s24, [#allocation11], %s4219_s26, %s4219_s26, %s4220_s27  }
  0x58   : > { %s4420_s18 = sadd.s32 1, %s4214_s12   ;;  %s38_s30 = sadd.s32 1, %s4210_s11 }
  0x59   : > { %s35_s20 = ssub.s32 %s4214_s12, %s4420_s18  ;;  %p45_p8 = scmp.ne.s32.totalorder %s4210_s11, %s4206_s10 }
  0x5a   : > { %p36_p4 = scmp.eq.s32.totalorder %s35_s20, 0  ;;  %p46_p13 = scmp.eq.s32.totalorder %s4214_s12, 0 }
  0x5b   : > { %p3765_p6 = scmp.lt.s32.totalorder %s4214_s12, 2  ;;  %p4884_p3 = scmp.eq.s32.totalorder %s4299_s13, 1 }
  0x5c   : > { %s4430_s14 = scalar_select %p36_p4, %s4210_s11, %s38_s30  }
  0x5d   : > { %p47_p10 = por %p46_p13, %p45_p8  ;;  %p4434_p5 = por %p4884_p3, %p45_p8 }
  0x5e   : > { %s327_s28 = sand.u32 1, %s4210_s11   ;;  %s3271_s29 = sshll.u32 %s4214_s12, 9 }
  0x5f   : > { %s3091_s24 = sshll.u32 %s327_s28, 5  ;;  %s4443_s25 = scalar_lea.hbm %s4859_s0, %s3271_s29 }
  0x60   : > { %s331_s19 = scalar_lea.vmem [#allocation4], %s3091_s24  ;;  %p4445_p11 = pnand %p3765_p6, %p47_p10 }
  0x61   : > { %s338_s22 = sshll.u32 %s331_s19, 4  ;;  %s4451_s20 = scalar_lea.sflag [#allocation5], %s327_s28  ;;  %s4449_s22 = int_to_ptr.vmem [resolvable:$true] %s338_s22 }
  0x62   : > { %s4050_s30 = scalar_lea.hbm %s4443_s25, 512  ;;  %p4052_p9 = pneg %p4445_p11 }
  0x63   : > { %p4051_p7 = scmp.ne.s32.totalorder %s4443_s25, %s4050_s30  ;;  %s4055_s21 = scalar_lea.hbm %s4859_s0, 1024 }
  0x64   : > { %p4056_p1 = scmp.lt.u32.totalorder %s4443_s25, %s4859_s0  ;;  %p4057_p2 = scmp.lt.u32.totalorder %s4055_s21, %s4050_s30 }
  0x65   : > { %p4053_p12 = pnand %p4052_p9, %p4051_p7  ;;  %p4059_p8 = scmp.lt.u32.totalorder %s4050_s30, %s4443_s25 }
  0x66   : > { %p4058_p4 = por %p4057_p2, %p4056_p1 }
  0x67   : > { %p4054_p0 = pneg %p4053_p12 }
  0x68   : > { %p4060_p13 = por %p4059_p8, %p4058_p4 }
  0x6a   : > { %p4061_p6 = pnand %p4060_p13, %p4054_p0 }
  0x6c   : > { %4064 = shalt.err (!%p4061_p6)
}
  0x6d   : > { %s4065_s28 = scalar_lea.vmem %s4449_s22, 512  ;;  %s4221_s29 = smov [#allocation4]  }
  0x6e   : > { %p4066_p10 = scmp.ne.s32.totalorder %s4449_s22, %s4065_s28  ;;  %s4070_s24 = sshll.u32 %s4221_s29, 4  ;;  %s4071_s24 = int_to_ptr.vmem [resolvable:$false] %s4070_s24 }
  0x6f   : > { %s4072_s23 = scalar_lea.vmem %s4071_s24, 1024  ;;  %p4073_p12 = scmp.lt.s32.totalorder %s4449_s22, %s4071_s24 }
  0x70   : > { %p4068_p3 = pnand %p4066_p10, %p4052_p9  ;;  %p4074_p1 = scmp.lt.s32.totalorder %s4072_s23, %s4065_s28 }
  0x72   : > { %p4069_p7 = pneg %p4068_p3  ;;  %p4075_p2 = por %p4074_p1, %p4073_p12 }
  0x74   : > { %p4076_p4 = pnand %p4075_p2, %p4069_p7 }
  0x76   : > { %4079 = shalt.err (!%p4076_p4)
}
  0x77   : > { %3751 = dma.hbm_to_vmem [thread:$0]  (!%p4445_p11), %s4443_s25, 512, %s4449_s22, %s4451_s20, %s4219_s26, %s4219_s26, %s4220_s27  }
  0x78   : > { %p4887_p9 = scmp.ne.s32.totalorder %s4881_s17, 0 }
  0x79   : > { %s4485_s30 = sand.u32 (!%p4887_p9), 1, %s4206_s10   ;;  %p4888_p0 = scmp.ne.s32.totalorder (!%p4887_p9), %s4878_s15, 0 }
  0x7a   : > { %350 = sbr.rel (%p4887_p9) target bundleno = 1022 (0x3fe), region = 48  ;;  %s3095_s21 = sshll.u32 (!%p4887_p9), %s4485_s30, 5 }
  0x7b   : > { %s353_s19 = scalar_lea.sflag (!%p4887_p9), [#allocation5], %s4485_s30  ;;  %s4489_s28 = scalar_lea.vmem (!%p4887_p9), [#allocation4], %s3095_s21 }
  0x81   : > { %4181 = dma.done.wait (%p4888_p0), %s353_s19, 512  }
  0x82   : > { %4183 = vsyncadd (%p4888_p0), %s353_s19, 4294966784  ;;  %p4889_p11 = scmp.eq.s32.totalorder %s4299_s13, 0 }
  0x84   : > { %4185 = dma.done.wait (%p4889_p11), [#allocation8], 10240   ;;  %p4890_p8 = pmov %p4889_p11 }
  0x86   : > { %4187 = vsyncadd (%p4890_p8), [#allocation8], 4294957056  ;;  %p4891_p13 = pmov %p4890_p8 }
  0x87   : > { %p4892_p6 = pmov %p4890_p8 }
  0x88   : > { %4189 = dma.done.wait (%p4891_p13), [#allocation11], 9216  }
  0x89   : > { %4191 = vsyncadd (%p4892_p6), [#allocation11], 4294958080  ;;  %v3810_v0 = vld [vmem:[#allocation7] sm:$0xff]   ;;  %v3811_v1 = vld [vmem:[#allocation7 + $0x8] sm:$0xff]   ;;  %v4222_v29 = vmov 0.0   ;;  %s3099_s15 = sshll.u32 %s4485_s30, 6 }
  0x8a   : > { %3630 = vmatprep.subr.bf16.mxu0 %v3810_v0  ;;  %v3812_v2 = vld [vmem:[#allocation7 + $0x10] sm:$0xff]   ;;  %v3813_v3 = vld [vmem:[#allocation7 + $0x18] sm:$0xff]   ;;  %v3818_v4 = vld [vmem:[%s4489_s28] sm:$0xff]   ;;  %590 = vst [vmem:[#allocation2] sm:$0xff] %v4222_v29  ;;  %s4513_s27 = scalar_lea.vmem [#allocation12], %s3099_s15  ;;  %s3272_s20 = sshll.u32 %s4299_s13, 10 }
  0x8b   : > { %3631 = vmatpush3.bf16.msra.mxu0 %v3810_v0  ;;  %3646 = vmatprep.mubr.bf16.mxu0 %v3818_v4  ;;  %v3814_v5 = vld [vmem:[#allocation7 + $0x20] sm:$0xff]   ;;  %v3825_v8 = vld [vmem:[#allocation9 + $0x48] sm:$0xff]   ;;  %v3829_v11 = vld [vmem:[#allocation9 + $0x50] sm:$0xff]   ;;  %591 = vst [vmem:[#allocation2 + $0x8] sm:$0x3] %v4222_v29  ;;  %s2893_s9 = sshll.u32 %s4513_s27, 4  ;;  %s4743_s23 = scalar_lea.hbm %s4866_s7, %s3272_s20  ;;  %s4736_s9 = int_to_ptr.vmem [resolvable:$true] %s2893_s9 }
  0x8c   : > { %3632 = vmatprep.subr.bf16.mxu0 %v3811_v1  ;;  %v3822_v6 = vld [vmem:[#allocation9 + $0x40] sm:$0xff]   ;;  %v3815_v9 = vld [vmem:[#allocation7 + $0x28] sm:$0xff]   ;;  %v3816_v12 = vld [vmem:[#allocation7 + $0x30] sm:$0xff]   ;;  %593 = vst [vmem:[#allocation2 + $0x90] sm:$0xff] %v4222_v29  ;;  %s2870_s21 = scalar_lea.sflag [#allocation6], %s4485_s30  ;;  %s4080_s19 = scalar_lea.vmem %s4736_s9, 1024 }
  0x8d   : > { %v3823_v7 = vld [vmem:[#allocation9] sm:$0xff]   ;;  %3286 = vmatprep.subr.bf16.mxu1 %v3822_v6  ;;  %v3827_v10 = vld [vmem:[#allocation9 + $0x8] sm:$0xff]   ;;  %v3831_v13 = vld [vmem:[#allocation9 + $0x10] sm:$0xff]   ;;  %594 = vst [vmem:[#allocation2 + $0x98] sm:$0x3] %v4222_v29  ;;  %p4081_p10 = scmp.ne.s32.totalorder %s4736_s9, %s4080_s19 }
  0x8e   : > { %3287 = vmatpush3.bf16.msra.mxu1 %v3823_v7  ;;  %v3833_v14 = vld [vmem:[#allocation9 + $0x58] sm:$0xff]   ;;  %v3824_v17 = vld [vmem:[#allocation9 + $0xc0] sm:$0xff]   ;;  %v3819_v18 = vld [vmem:[%s4489_s28 + $0x8] sm:$0xff]   ;;  %596 = vst [vmem:[#allocation2 + $0x10] sm:$0x1] %v4222_v29 }
  0x8f   : > { %3633 = vmatpush3.bf16.msra.mxu0 %v3811_v1  ;;  %3288 = vmatprep.subr.bf16.mxu1 %v3825_v8  ;;  %v3817_v15 = vld [vmem:[#allocation7 + $0x38] sm:$0xff]   ;;  %v3820_v19 = vld [vmem:[%s4489_s28 + $0x10] sm:$0xff]   ;;  %v3826_v20 = vld [vmem:[#allocation9 + $0x80] sm:$0xff]   ;;  %597 = vst [vmem:[#allocation2 + $0x20] sm:$0x1] %v4222_v29  ;;  %p4082_p3 = pnand %p4081_p10, %p4434_p5 }
  0x90   : > { %3634 = vmatprep.subr.bf16.mxu0 %v3812_v2  ;;  %v3835_v16 = vld [vmem:[#allocation9 + $0x18] sm:$0xff]   ;;  %v3828_v21 = vld [vmem:[#allocation9 + $0xc8] sm:$0xff]   ;;  %v3832_v23 = vld [vmem:[#allocation9 + $0xd0] sm:$0xff]   ;;  %598 = vst [vmem:[#allocation2 + $0x30] sm:$0x1] %v4222_v29 }
  0x91   : > { %v3830_v22 = vld [vmem:[#allocation9 + $0x88] sm:$0xff]   ;;  %v3821_v24 = vld [vmem:[%s4489_s28 + $0x18] sm:$0xff]   ;;  %v3834_v25 = vld [vmem:[#allocation9 + $0x90] sm:$0xff]   ;;  %599 = vst [vmem:[#allocation2 + $0x40] sm:$0x1] %v4222_v29  ;;  %p4083_p7 = pneg %p4082_p3  ;;  %s4223_s28 = smov [#allocation12]  }
  0x92   : > { %3289 = vmatpush3.bf16.msra.mxu1 %v3827_v10  ;;  %v3836_v26 = vld [vmem:[#allocation9 + $0xd8] sm:$0xff]   ;;  %v3837_v27 = vld [vmem:[#allocation9 + $0x60] sm:$0xff]   ;;  %600 = vst [vmem:[#allocation2 + $0x50] sm:$0x1] %v4222_v29  ;;  %601 = vst [vmem:[#allocation2 + $0x60] sm:$0x1] %v4222_v29 }
  0x93   : > { %3635 = vmatpush3.bf16.msra.mxu0 %v3812_v2  ;;  %3290 = vmatprep.subr.bf16.mxu1 %v3829_v11  ;;  %v3838_v28 = vld [vmem:[#allocation9 + $0x98] sm:$0xff]   ;;  %602 = vst [vmem:[#allocation2 + $0x70] sm:$0x1] %v4222_v29  ;;  %603 = vst [vmem:[#allocation2 + $0x80] sm:$0x1] %v4222_v29  ;;  %v3839_v30 = vld [vmem:[#allocation9 + $0x20] sm:$0xff]  }
  0x94   : > { %3636 = vmatprep.subr.bf16.mxu0 %v3813_v3  ;;  %606 = vst [vmem:[#allocation2 + $0x19] sm:$0x1] %v4222_v29  ;;  %607 = vst [vmem:[#allocation2 + $0x29] sm:$0x1] %v4222_v29  ;;  %v3840_v31 = vld [vmem:[#allocation9 + $0xe0] sm:$0xff]   ;;  %v3841_v32 = vld [vmem:[#allocation9 + $0x68] sm:$0xff]  }
  0x95   : > { %608 = vst [vmem:[#allocation2 + $0x39] sm:$0x1] %v4222_v29  ;;  %609 = vst [vmem:[#allocation2 + $0x49] sm:$0x1] %v4222_v29  ;;  %v3842_v33 = vld [vmem:[#allocation9 + $0xa0] sm:$0xff]   ;;  %v3843_v34 = vld [vmem:[#allocation9 + $0x28] sm:$0xff]  }
  0x96   : > { %3291 = vmatpush3.bf16.msra.mxu1 %v3831_v13  ;;  %610 = vst [vmem:[#allocation2 + $0x59] sm:$0x1] %v4222_v29  ;;  %611 = vst [vmem:[#allocation2 + $0x69] sm:$0x1] %v4222_v29  ;;  %v3844_v35 = vld [vmem:[#allocation9 + $0xe8] sm:$0xff]   ;;  %v3845_v36 = vld [vmem:[#allocation9 + $0x70] sm:$0xff]  }
  0x97   : > { %3637 = vmatpush3.bf16.msra.mxu0 %v3813_v3  ;;  %3292 = vmatprep.subr.bf16.mxu1 %v3833_v14  ;;  %612 = vst [vmem:[#allocation2 + $0x79] sm:$0x1] %v4222_v29  ;;  %613 = vst [vmem:[#allocation2 + $0x89] sm:$0x1] %v4222_v29  ;;  %v3846_v37 = vld [vmem:[#allocation9 + $0xa8] sm:$0xff]   ;;  %v3847_v38 = vld [vmem:[#allocation9 + $0x30] sm:$0xff]  }
  0x98   : > { %3638 = vmatprep.subr.bf16.mxu0 %v3814_v5  ;;  %605 = vst [vmem:[#allocation2 + $0x9] sm:$0x1] %v4222_v29  ;;  %595 = vst [vmem:[#allocation2] sm:$0x1] %v4222_v29  ;;  %v3848_v39 = vld [vmem:[#allocation9 + $0xf0] sm:$0xff]   ;;  %v3849_v40 = vld [vmem:[#allocation9 + $0x78] sm:$0xff]  }
  0x99   : > { %604 = vst [vmem:[#allocation2 + $0x90] sm:$0x1] %v4222_v29  ;;  %614 = vst [vmem:[#allocation2 + $0x99] sm:$0x1] %v4222_v29  ;;  %v3850_v41 = vld [vmem:[#allocation9 + $0xb0] sm:$0xff]   ;;  %v3851_v42 = vld [vmem:[#allocation9 + $0x38] sm:$0xff]  }
  0x9a   : > { %3293 = vmatpush3.bf16.msra.mxu1 %v3835_v16  ;;  %v3852_v43 = vld [vmem:[#allocation9 + $0xf8] sm:$0xff]   ;;  %v3854_v45 = vld [vmem:[#allocation9 + $0x140] sm:$0xff]   ;;  %v3859_v29 = vld [vmem:[#allocation9 + $0x108] sm:$0xff]   ;;  %s4084_s17 = sshll.u32 %s4223_s28, 4  ;;  %s4085_s17 = int_to_ptr.vmem [resolvable:$false] %s4084_s17 }
  0x9b   : > { %3639 = vmatpush3.bf16.msra.mxu0 %v3814_v5  ;;  %3294 = vmatprep.subr.bf16.mxu1 %v3837_v27  ;;  %v3853_v44 = vld [vmem:[#allocation9 + $0xb8] sm:$0xff]   ;;  %v3856_v46 = vld [vmem:[#allocation9 + $0x1c0] sm:$0xff]   ;;  %s4086_s26 = scalar_lea.vmem %s4085_s17, 2048  ;;  %p4087_p12 = scmp.lt.s32.totalorder %s4736_s9, %s4085_s17 }
  0x9c   : > { %3640 = vmatprep.subr.bf16.mxu0 %v3815_v9  ;;  %v3102_v47 = vld [vmem:[%s4861_s2] ss:$0 sm:$0xff]  ;;  %v649_v56 = vld [vmem:[#allocation2 + $0x1] sm:$0xff]  ;;  %p4088_p1 = scmp.lt.s32.totalorder %s4086_s26, %s4080_s19 }
  0x9d   : > { %v3855_v14 = vld [vmem:[#allocation9 + $0x100] sm:$0xff]  }
  0x9e   : > { %3295 = vmatpush3.bf16.msra.mxu1 %v3839_v30  ;;  %v3860_v30 = vld [vmem:[#allocation9 + $0x1c8] sm:$0xff]   ;;  %p4089_p2 = por %p4088_p1, %p4087_p12 }
  0x9f   : > { %3641 = vmatpush3.bf16.msra.mxu0 %v3815_v9  ;;  %3296 = vmatprep.subr.bf16.mxu1 %v3841_v32  ;;  %v633_v9 = vld [vmem:[#allocation2] sm:$0xff] }
  0xa0   : > { %3642 = vmatprep.subr.bf16.mxu0 %v3816_v12  ;;  %p4090_p4 = pnand %p4089_p2, %p4083_p7 }
  0xa2   : > { %3297 = vmatpush3.bf16.msra.mxu1 %v3843_v34  ;;  %v3862_v34 = vld [vmem:[#allocation9 + $0x188] sm:$0xff]  }
  0xa3   : > { %3643 = vmatpush3.bf16.msra.mxu0 %v3816_v12  ;;  %3298 = vmatprep.subr.bf16.mxu1 %v3845_v36 }
  0xa4   : > { %3644 = vmatprep.subr.bf16.mxu0 %v3817_v15 }
  0xa6   : > { %3299 = vmatpush3.bf16.msra.mxu1 %v3847_v38  ;;  %v3864_v38 = vld [vmem:[#allocation9 + $0x1d0] sm:$0xff]  }
  0xa7   : > { %3645 = vmatpush3.bf16.msra.mxu0 %v3817_v15  ;;  %3300 = vmatprep.subr.bf16.mxu1 %v3849_v40 }
  0xa8   : > { %3326 = vmatprep.subr.bf16.mxu0 %v3824_v17  ;;  %v665_v17 = vld [vmem:[#allocation2 + $0x2] sm:$0xff] }
  0xaa   : > { %3647 = vmatmul.mubr.bf16.vlgmr.msra.gmra.mrb[0].mxu0 %v3819_v18  ;;  %3301 = vmatpush3.bf16.msra.mxu1 %v3851_v42 }
  0xab   : > { %3650 = vmatprep.mubr.bf16.mxu0 %v3820_v19  ;;  %3327 = vmatpush3.bf16.msra.mxu0 %v3826_v20  ;;  %v3857_v19 = vld [vmem:[#allocation9 + $0x148] sm:$0xff]  }
  0xac   : > { %3328 = vmatprep.subr.bf16.mxu0 %v3828_v21  ;;  %3366 = vmatprep.subr.bf16.mxu1 %v3854_v45 }
  0xaf   : > { %3329 = vmatpush3.bf16.msra.mxu0 %v3830_v22 }
  0xb0   : > { %3330 = vmatprep.subr.bf16.mxu0 %v3832_v23 }
  0xb2   : > { %3651 = vmatmul.mubr.bf16.gmra.mrb[4].mxu0 %v3821_v24 }
  0xb3   : > { %3331 = vmatpush3.bf16.msra.mxu0 %v3834_v25  ;;  %v3858_v25 = vld [vmem:[#allocation9 + $0x180] sm:$0xff]  }
  0xb4   : > { %3332 = vmatprep.subr.bf16.mxu0 %v3836_v26 }
  0xb7   : > { %3333 = vmatpush3.bf16.msra.mxu0 %v3838_v28 }
  0xb8   : > { %3334 = vmatprep.subr.bf16.mxu0 %v3840_v31 }
  0xbb   : > { %3335 = vmatpush3.bf16.msra.mxu0 %v3842_v33  ;;  %v3861_v33 = vld [vmem:[#allocation9 + $0x150] sm:$0xff]  }
  0xbc   : > { %3336 = vmatprep.subr.bf16.mxu0 %v3844_v35  ;;  %v3863_v35 = vld [vmem:[#allocation9 + $0x110] sm:$0xff]  }
  0xbf   : > { %3337 = vmatpush3.bf16.msra.mxu0 %v3846_v37 }
  0xc0   : > { %3338 = vmatprep.subr.bf16.mxu0 %v3848_v39  ;;  %v3865_v39 = vld [vmem:[#allocation9 + $0x158] sm:$0xff]  }
  0xc3   : > { %3339 = vmatpush3.bf16.msra.mxu0 %v3850_v41 }
  0xc4   : > { %3340 = vmatprep.subr.bf16.mxu0 %v3852_v43  ;;  %v3866_v43 = vld [vmem:[#allocation9 + $0x190] sm:$0xff]  }
  0xc7   : > { %3341 = vmatpush3.bf16.msra.mxu0 %v3853_v44 }
  0xc8   : > { %3406 = vmatprep.subr.bf16.mxu0 %v3856_v46  ;;  %v3867_v46 = vld [vmem:[#allocation9 + $0x118] sm:$0xff]  }
 0x17d   : > { %v3648_v48 = vpop.f32.mrb[0].mxu0 }
 0x17e   : > { %v560_v49 = vadd.f32 %v3648_v48, %v3102_v47  ;;  %v551_v50 = vpop.f32.mrb[1].mxu0  ;;  %v3869_v48 = vld [vmem:[#allocation9 + $0x160] sm:$0xff]  }
 0x17f   : > { %v552_v51 = vadd.f32 %v3102_v47, %v551_v50  ;;  %v3649_v52 = vpop.f32.mrb[2].mxu0  ;;  %v3871_v50 = vld [vmem:[#allocation9 + $0x120] sm:$0xff]  }
 0x180   : > { %584 = vst [vmem:[%s4513_s27 + $0x10] sm:$0xff] %v560_v49  ;;  %v4516_v53 = vmax.f32 %v560_v49, 0.0  ;;  %v563_v54 = vadd.f32 %v3649_v52, %v3102_v47  ;;  %v554_v55 = vpop.f32.mrb[3].mxu0  ;;  %v3870_v49 = vld [vmem:[#allocation9 + $0x198] sm:$0xff]  }
 0x181   : > { %582 = vst [vmem:[%s4513_s27] sm:$0xff] %v552_v51  ;;  %v4519_v57 = vmax.f32 %v552_v51, 0.0  ;;  %v555_v58 = vadd.f32 %v3102_v47, %v554_v55  ;;  %v3873_v55 = vld [vmem:[#allocation9 + $0x168] sm:$0xff]  }
 0x182   : > { %627 = vst [vmem:[#allocation2 + $0x31] sm:$0xff] %v4516_v53  ;;  %585 = vst [vmem:[%s4513_s27 + $0x18] sm:$0xff] %v563_v54  ;;  %v4523_v59 = vmax.f32 %v563_v54, 0.0  ;;  %v3872_v54 = vld [vmem:[#allocation9 + $0x1e0] sm:$0xff]  }
 0x183   : > { %625 = vst [vmem:[#allocation2 + $0x11] sm:$0xff] %v4519_v57  ;;  %583 = vst [vmem:[%s4513_s27 + $0x8] sm:$0xff] %v555_v58  ;;  %v4527_v60 = vmax.f32 %v555_v58, 0.0  ;;  %v657_v61 = vpack.c.bf16 %v4519_v57, %v649_v56 }
 0x184   : > { %628 = vst [vmem:[#allocation2 + $0x41] sm:$0xff] %v4523_v59  ;;  %v706_v62 = vpack.c.bf16 %v4523_v59, %v4516_v53 }
 0x185   : > { %626 = vst [vmem:[#allocation2 + $0x21] sm:$0xff] %v4527_v60  ;;  %v3652_v63 = vpop.f32.mrb[4].mxu0  ;;  %1428 = vmatprep.mubr.bf16.mxu1 %v657_v61  ;;  %v4536_v0 = vpack.c.bf16 %v4516_v53, %v4527_v60  ;;  %v705_v1 = vpack.c.bf16 %v4527_v60, %v4519_v57  ;;  %v3890_v57 = vld [vmem:[#allocation9 + $0x220] sm:$0xff]  }
 0x186   : > { %v576_v2 = vadd.f32 %v3652_v63, %v3102_v47  ;;  %v567_v3 = vpop.f32.mrb[5].mxu0  ;;  %v3874_v63 = vld [vmem:[#allocation9 + $0x1a0] sm:$0xff]  }
 0x187   : > { %v568_v4 = vadd.f32 %v3102_v47, %v567_v3  ;;  %v3653_v5 = vpop.f32.mrb[6].mxu0  ;;  %v3875_v3 = vld [vmem:[#allocation9 + $0x128] sm:$0xff]  }
 0x188   : > { %588 = vst [vmem:[%s4513_s27 + $0x30] sm:$0xff] %v576_v2  ;;  %v4541_v6 = vmax.f32 %v576_v2, 0.0  ;;  %v579_v7 = vadd.f32 %v3653_v5, %v3102_v47  ;;  %v570_v8 = vpop.f32.mrb[7].mxu0 }
 0x189   : > { %586 = vst [vmem:[%s4513_s27 + $0x20] sm:$0xff] %v568_v4  ;;  %v4544_v10 = vmax.f32 %v568_v4, 0.0  ;;  %v571_v11 = vadd.f32 %v3102_v47, %v570_v8  ;;  %v683_v28 = vld [vmem:[#allocation2 + $0x30] sm:$0xff]  ;;  %v3868_v47 = vld [vmem:[#allocation9 + $0x1d8] sm:$0xff]   ;;  %v3876_v4 = vld [vmem:[#allocation9 + $0x1e8] sm:$0xff]  }
 0x18a   : > { %631 = vst [vmem:[#allocation2 + $0x71] sm:$0xff] %v4541_v6  ;;  %589 = vst [vmem:[%s4513_s27 + $0x38] sm:$0xff] %v579_v7  ;;  %v4548_v12 = vmax.f32 %v579_v7, 0.0  ;;  %v634_v13 = vld [vmem:[#allocation2 + $0x10] sm:$0xff]  ;;  %v3878_v8 = vld [vmem:[#allocation9 + $0x1a8] sm:$0xff]  }
 0x18b   : > { %629 = vst [vmem:[#allocation2 + $0x51] sm:$0xff] %v4544_v10  ;;  %587 = vst [vmem:[%s4513_s27 + $0x28] sm:$0xff] %v571_v11  ;;  %v4552_v15 = vmax.f32 %v571_v11, 0.0  ;;  %v641_v16 = vpack.c.bf16 %v634_v13, %v633_v9  ;;  %v4554_v18 = vld [vmem:[#allocation2 + $0x12] sm:$0xff]  ;;  %v4558_v20 = vpack.c.bf16 %v4544_v10, %v4523_v59  ;;  %v684_v22 = vld [vmem:[#allocation2 + $0x40] sm:$0xff] }
 0x18c   : > { %632 = vst [vmem:[#allocation2 + $0x81] sm:$0xff] %v4548_v12  ;;  %v682_v21 = vld [vmem:[#allocation2 + $0x20] sm:$0xff]  ;;  %v708_v23 = vpack.c.bf16 %v4548_v12, %v4541_v6  ;;  %v673_v27 = vpack.c.bf16 %v4554_v18, %v665_v17  ;;  %v690_v32 = vpack.c.bf16 %v684_v22, %v683_v28  ;;  %v4577_v42 = vld [vmem:[#allocation2 + $0x32] sm:$0xff] }
 0x18d   : > { %630 = vst [vmem:[#allocation2 + $0x61] sm:$0xff] %v4552_v15  ;;  %1429 = vmatmul.mubr.bf16.vlgmr.msra.gmra.mrb[0].mxu1 %v641_v16  ;;  %v689_v24 = vpack.c.bf16 %v682_v21, %v634_v13  ;;  %v4566_v26 = vpack.c.bf16 %v4541_v6, %v4552_v15  ;;  %v707_v31 = vpack.c.bf16 %v4552_v15, %v4544_v10  ;;  %v4574_v37 = vld [vmem:[#allocation2 + $0x22] sm:$0xff]  ;;  %v3877_v7 = vld [vmem:[#allocation9 + $0x170] sm:$0xff]   ;;  %v3881_v17 = vld [vmem:[#allocation9 + $0x178] sm:$0xff]  }
 0x18e   : > { %3367 = vmatpush3.bf16.msra.mxu1 %v3855_v14  ;;  %1436 = vmatprep.mubr.bf16.mxu1 %v4536_v0  ;;  %v4572_v36 = vpack.c.bf16 %v683_v28, %v682_v21  ;;  %v4582_v45 = vpack.c.bf16 %v4577_v42, %v4574_v37  ;;  %v669_v61 = vld [vmem:[#allocation2 + $0x42] sm:$0xff]  ;;  %v3879_v9 = vld [vmem:[#allocation9 + $0x130] sm:$0xff]   ;;  %v3885_v28 = vld [vmem:[#allocation9 + $0x1b8] sm:$0xff]  }
 0x18f   : > { %1493 = vmatprep.mubr.bf16.mxu0 %v689_v24  ;;  %3368 = vmatprep.subr.bf16.mxu1 %v3857_v19  ;;  %v3880_v11 = vld [vmem:[#allocation9 + $0x1f0] sm:$0xff]   ;;  %v721_v19 = vpack.c.bf16 %v4574_v37, %v4554_v18  ;;  %v3883_v24 = vld [vmem:[#allocation9 + $0x138] sm:$0xff]   ;;  %v3887_v18 = vld [vmem:[#allocation9 + $0x208] sm:$0xff]  }
 0x190   : > { %1494 = vmatmul.mubr.bf16.vlgmr.msra.gmra.mrb[8].mxu0 %v673_v27  ;;  %v3882_v21 = vld [vmem:[#allocation9 + $0x1b0] sm:$0xff]   ;;  %v3886_v27 = vld [vmem:[#allocation9 + $0x200] sm:$0xff]   ;;  %v3900_v37 = vld [vmem:[#allocation10 + $0xc8] sm:$0xff]  }
 0x191   : > { %1501 = vmatprep.mubr.bf16.mxu0 %v690_v32  ;;  %3407 = vmatpush3.bf16.msra.mxu0 %v3858_v25  ;;  %v687_v56 = vld [vmem:[#allocation2 + $0x70] sm:$0xff]  ;;  %v3884_v25 = vld [vmem:[#allocation9 + $0x1f8] sm:$0xff]   ;;  %v3896_v6 = vld [vmem:[#allocation10 + $0xc0] sm:$0xff]  }
 0x192   : > { %3369 = vmatpush3.bf16.msra.mxu1 %v3859_v29  ;;  %3408 = vmatprep.subr.bf16.mxu0 %v3860_v30  ;;  %v685_v40 = vld [vmem:[#allocation2 + $0x50] sm:$0xff]  ;;  %v722_v29 = vpack.c.bf16 %v669_v61, %v4577_v42  ;;  %v3905_v42 = vld [vmem:[#allocation10 + $0x58] sm:$0xff]  }
 0x193   : > { %3370 = vmatprep.subr.bf16.mxu1 %v3861_v33  ;;  %v4585_v51 = vpack.c.bf16 %v685_v40, %v684_v22  ;;  %v4587_v52 = vld [vmem:[#allocation2 + $0x52] sm:$0xff]  ;;  %v4589_v58 = vld [vmem:[#allocation2 + $0x80] sm:$0xff] }
 0x194   : > { %v686_v41 = vld [vmem:[#allocation2 + $0x60] sm:$0xff]  ;;  %v4594_v2 = vpack.c.bf16 %v4587_v52, %v669_v61  ;;  %v692_v5 = vpack.c.bf16 %v4589_v58, %v687_v56  ;;  %v672_v16 = vld [vmem:[#allocation2 + $0x72] sm:$0xff] }
 0x195   : > { %3409 = vmatpush3.bf16.msra.mxu0 %v3862_v34  ;;  %1437 = vmatmul.mubr.bf16.gmra.mrb[4].mxu1 %v4572_v36  ;;  %v691_v44 = vpack.c.bf16 %v686_v41, %v685_v40  ;;  %v644_v13 = vpack.c.bf16 %v687_v56, %v686_v41  ;;  %v671_v14 = vld [vmem:[#allocation2 + $0x62] sm:$0xff]  ;;  %v3888_v30 = vld [vmem:[#allocation9 + $0x210] sm:$0xff]  }
 0x196   : > { %3371 = vmatpush3.bf16.msra.mxu1 %v3863_v35  ;;  %1444 = vmatprep.mubr.bf16.mxu1 %v4558_v20  ;;  %v676_v22 = vpack.c.bf16 %v672_v16, %v671_v14  ;;  %v723_v32 = vpack.c.bf16 %v671_v14, %v4587_v52  ;;  %v720_v60 = vld [vmem:[#allocation2 + $0x82] sm:$0xff]  ;;  %v753_v33 = vld [vmem:[#allocation2 + $0x91] sm:$0xff] }
 0x197   : > { %3410 = vmatprep.subr.bf16.mxu0 %v3864_v38  ;;  %3372 = vmatprep.subr.bf16.mxu1 %v3865_v39  ;;  %v757_v53 = vpack.c.bf16 %v753_v33, %v4548_v12  ;;  %v3892_v59 = vld [vmem:[#allocation9 + $0x230] sm:$0xff]   ;;  %v3894_v34 = vld [vmem:[#allocation10 + $0x40] sm:$0xff]   ;;  %v3897_v12 = vld [vmem:[#allocation10 + $0x48] sm:$0xff]  }
 0x198   : > { %1502 = vmatmul.mubr.bf16.gmra.mrb[12].mxu0 %v4582_v45  ;;  %v769_v15 = vld [vmem:[#allocation2 + $0x92] sm:$0xff]  ;;  %v3895_v35 = vld [vmem:[#allocation10] sm:$0xff]   ;;  %v3902_v39 = vld [vmem:[#allocation10 + $0x88] sm:$0xff]  }
 0x199   : > { %3411 = vmatpush3.bf16.msra.mxu0 %v3866_v43  ;;  %1509 = vmatprep.mubr.bf16.mxu0 %v691_v44  ;;  %v3901_v38 = vld [vmem:[#allocation10 + $0x50] sm:$0xff]   ;;  %v3907_v44 = vld [vmem:[#allocation10 + $0x18] sm:$0xff]   ;;  %v3915_v52 = vld [vmem:[#allocation10 + $0x28] sm:$0xff]  }
 0x19a   : > { %3373 = vmatpush3.bf16.msra.mxu1 %v3867_v46  ;;  %3412 = vmatprep.subr.bf16.mxu0 %v3868_v47  ;;  %v3903_v40 = vld [vmem:[#allocation10 + $0x10] sm:$0xff]   ;;  %v3909_v46 = vld [vmem:[#allocation10 + $0x60] sm:$0xff]   ;;  %v3910_v47 = vld [vmem:[#allocation10 + $0x98] sm:$0xff]  }
 0x19b   : > { %3374 = vmatprep.subr.bf16.mxu1 %v3869_v48  ;;  %v3904_v41 = vld [vmem:[#allocation10 + $0xd0] sm:$0xff]   ;;  %v3911_v48 = vld [vmem:[#allocation10 + $0x20] sm:$0xff]   ;;  %v3918_v56 = vld [vmem:[#allocation10 + $0xa8] sm:$0xff]  }
 0x19c   : > { %v3906_v43 = vld [vmem:[#allocation10 + $0x90] sm:$0xff]  }
 0x19d   : > { %3413 = vmatpush3.bf16.msra.mxu0 %v3870_v49  ;;  %1445 = vmatmul.mubr.bf16.gmra.mrb[8].mxu1 %v4585_v51  ;;  %v3912_v49 = vld [vmem:[#allocation10 + $0xe0] sm:$0xff]   ;;  %v3920_v61 = vld [vmem:[#allocation10 + $0xf0] sm:$0xff]  }
 0x19e   : > { %3375 = vmatpush3.bf16.msra.mxu1 %v3871_v50  ;;  %1452 = vmatprep.mubr.bf16.mxu1 %v4566_v26  ;;  %v3913_v50 = vld [vmem:[#allocation10 + $0x68] sm:$0xff]  }
 0x19f   : > { %3414 = vmatprep.subr.bf16.mxu0 %v3872_v54  ;;  %3376 = vmatprep.subr.bf16.mxu1 %v3873_v55  ;;  %v3916_v54 = vld [vmem:[#allocation10 + $0xe8] sm:$0xff]   ;;  %v3917_v55 = vld [vmem:[#allocation10 + $0x70] sm:$0xff]  }
 0x1a0   : > { %1510 = vmatmul.mubr.bf16.gmra.mrb[16].mxu0 %v4594_v2 }
 0x1a1   : > { %1517 = vmatprep.mubr.bf16.mxu0 %v692_v5  ;;  %3415 = vmatpush3.bf16.msra.mxu0 %v3874_v63  ;;  %v3921_v63 = vld [vmem:[#allocation10 + $0x78] sm:$0xff]  }
 0x1a2   : > { %3377 = vmatpush3.bf16.msra.mxu1 %v3875_v3  ;;  %3416 = vmatprep.subr.bf16.mxu0 %v3876_v4  ;;  %v3923_v3 = vld [vmem:[#allocation10 + $0x38] sm:$0xff]  }
 0x1a3   : > { %3378 = vmatprep.subr.bf16.mxu1 %v3877_v7  ;;  %v3924_v4 = vld [vmem:[#allocation10 + $0xf8] sm:$0xff]   ;;  %v3926_v7 = vld [vmem:[#allocation10 + $0x140] sm:$0xff]  }
 0x1a4   : > { %v3925_v5 = vld [vmem:[#allocation10 + $0xb8] sm:$0xff]  }
 0x1a5   : > { %3417 = vmatpush3.bf16.msra.mxu0 %v3878_v8  ;;  %1453 = vmatmul.mubr.bf16.gmra.mrb[12].mxu1 %v644_v13  ;;  %v3928_v8 = vld [vmem:[#allocation10 + $0x1c0] sm:$0xff]  }
 0x1a6   : > { %3379 = vmatpush3.bf16.msra.mxu1 %v3879_v9  ;;  %1558 = vmatprep.mubr.bf16.mxu1 %v721_v19 }
 0x1a7   : > { %3418 = vmatprep.subr.bf16.mxu0 %v3880_v11  ;;  %3380 = vmatprep.subr.bf16.mxu1 %v3881_v17  ;;  %v3115_v11 = vld [vmem:[%s4863_s4] ss:$0 sm:$0xff] }
 0x1a8   : > { %1518 = vmatmul.mubr.bf16.gmra.mrb[20].mxu0 %v676_v22 }
 0x1a9   : > { %3419 = vmatpush3.bf16.msra.mxu0 %v3882_v21  ;;  %1623 = vmatprep.mubr.bf16.mxu0 %v4536_v0  ;;  %v3889_v0 = vld [vmem:[#allocation9 + $0x218] sm:$0xff]  }
 0x1aa   : > { %3381 = vmatpush3.bf16.msra.mxu1 %v3883_v24  ;;  %3420 = vmatprep.subr.bf16.mxu0 %v3884_v25 }
 0x1ab   : > { %3654 = vmatprep.subr.bf16.mxu1 %v3886_v27 }
 0x1ad   : > { %3421 = vmatpush3.bf16.msra.mxu0 %v3885_v28  ;;  %1559 = vmatmul.mubr.bf16.vlgmr.msra.gmra.mrb[16].mxu1 %v705_v1  ;;  %v3891_v1 = vld [vmem:[#allocation9 + $0x228] sm:$0xff]  }
 0x1ae   : > { %3655 = vmatpush3.bf16.msra.mxu1 %v3886_v27  ;;  %1566 = vmatprep.mubr.bf16.mxu1 %v722_v29 }
 0x1af   : > { %3656 = vmatprep.subr.bf16.mxu1 %v3887_v18  ;;  %3458 = vmatprep.subr.bf16.mxu0 %v3894_v34 }
 0x1b0   : > { %1624 = vmatmul.mubr.bf16.vlgmr.msra.gmra.mrb[24].mxu0 %v4572_v36  ;;  %v3899_v36 = vld [vmem:[#allocation10 + $0x8] sm:$0xff]  }
 0x1b1   : > { %1631 = vmatprep.mubr.bf16.mxu0 %v4558_v20  ;;  %v724_v20 = vpack.c.bf16 %v720_v60, %v672_v16  ;;  %3459 = vmatpush3.bf16.msra.mxu0 %v3895_v35 }
 0x1b2   : > { %3657 = vmatpush3.bf16.msra.mxu1 %v3887_v18  ;;  %3460 = vmatprep.subr.bf16.mxu0 %v3897_v12 }
 0x1b3   : > { %3658 = vmatprep.subr.bf16.mxu1 %v3888_v30 }
 0x1b5   : > { %1567 = vmatmul.mubr.bf16.gmra.mrb[20].mxu1 %v706_v62  ;;  %v737_v62 = vld [vmem:[#allocation2 + $0x90] sm:$0xff]  ;;  %3461 = vmatpush3.bf16.msra.mxu0 %v3899_v36 }
 0x1b6   : > { %3659 = vmatpush3.bf16.msra.mxu1 %v3888_v30  ;;  %1574 = vmatprep.mubr.bf16.mxu1 %v723_v32  ;;  %v741_v10 = vpack.c.bf16 %v737_v62, %v4589_v58  ;;  %v3919_v58 = vld [vmem:[#allocation10 + $0x30] sm:$0xff]  }
 0x1b7   : > { %3660 = vmatprep.subr.bf16.mxu1 %v3889_v0  ;;  %3462 = vmatprep.subr.bf16.mxu0 %v3901_v38 }
 0x1b8   : > { %1632 = vmatmul.mubr.bf16.gmra.mrb[28].mxu0 %v4585_v51  ;;  %v3914_v51 = vld [vmem:[#allocation10 + $0xa0] sm:$0xff]  }
 0x1b9   : > { %1639 = vmatprep.mubr.bf16.mxu0 %v4566_v26  ;;  %v3893_v26 = vld [vmem:[#allocation9 + $0x238] sm:$0xff]   ;;  %3463 = vmatpush3.bf16.msra.mxu0 %v3903_v40 }
 0x1ba   : > { %3661 = vmatpush3.bf16.msra.mxu1 %v3889_v0  ;;  %3464 = vmatprep.subr.bf16.mxu0 %v3905_v42 }
 0x1bb   : > { %3662 = vmatprep.subr.bf16.mxu1 %v3890_v57 }
 0x1bd   : > { %1575 = vmatmul.mubr.bf16.gmra.mrb[24].mxu1 %v707_v31  ;;  %v773_v31 = vpack.c.bf16 %v769_v15, %v720_v60  ;;  %3465 = vmatpush3.bf16.msra.mxu0 %v3907_v44 }
 0x1be   : > { %3663 = vmatpush3.bf16.msra.mxu1 %v3890_v57  ;;  %1582 = vmatprep.mubr.bf16.mxu1 %v724_v20 }
 0x1bf   : > { %3664 = vmatprep.subr.bf16.mxu1 %v3891_v1  ;;  %3466 = vmatprep.subr.bf16.mxu0 %v3909_v46 }
 0x1c0   : > { %1640 = vmatmul.mubr.bf16.gmra.mrb[32].mxu0 %v644_v13 }
 0x1c1   : > { %1647 = vmatprep.mubr.bf16.mxu0 %v757_v53  ;;  %3467 = vmatpush3.bf16.msra.mxu0 %v3911_v48 }
 0x1c2   : > { %3665 = vmatpush3.bf16.msra.mxu1 %v3891_v1  ;;  %3468 = vmatprep.subr.bf16.mxu0 %v3913_v50 }
 0x1c3   : > { %3666 = vmatprep.subr.bf16.mxu1 %v3892_v59 }
 0x1c5   : > { %1583 = vmatmul.mubr.bf16.gmra.mrb[28].mxu1 %v708_v23  ;;  %v3898_v23 = vld [vmem:[#allocation10 + $0x80] sm:$0xff]   ;;  %3469 = vmatpush3.bf16.msra.mxu0 %v3915_v52 }
 0x1c6   : > { %3667 = vmatpush3.bf16.msra.mxu1 %v3892_v59  ;;  %3670 = vmatprep.mubr.bf16.mxu1 %v4582_v45  ;;  %v3908_v45 = vld [vmem:[#allocation10 + $0xd8] sm:$0xff]  }
 0x1c7   : > { %3668 = vmatprep.subr.bf16.mxu1 %v3893_v26  ;;  %3470 = vmatprep.subr.bf16.mxu0 %v3917_v55 }
 0x1c8   : > { %1648 = vmatmul.mubr.bf16.gmra.mrb[36].mxu0 %v741_v10 }
 0x1c9   : > { %3471 = vmatpush3.bf16.msra.mxu0 %v3919_v58 }
 0x1ca   : > { %3669 = vmatpush3.bf16.msra.mxu1 %v3893_v26  ;;  %3472 = vmatprep.subr.bf16.mxu0 %v3921_v63 }
 0x1cb   : > { %3498 = vmatprep.subr.bf16.mxu1 %v3896_v6 }
 0x1cd   : > { %3671 = vmatmul.mubr.bf16.vlgmr.msra.gmra.mrb[32].mxu1 %v4594_v2  ;;  %v3922_v2 = vld [vmem:[#allocation10 + $0xb0] sm:$0xff]   ;;  %3473 = vmatpush3.bf16.msra.mxu0 %v3923_v3 }
 0x1ce   : > { %3674 = vmatprep.mubr.bf16.mxu1 %v676_v22  ;;  %3499 = vmatpush3.bf16.msra.mxu1 %v3898_v23 }
 0x1cf   : > { %3500 = vmatprep.subr.bf16.mxu1 %v3900_v37  ;;  %3538 = vmatprep.subr.bf16.mxu0 %v3926_v7 }
 0x1d2   : > { %3501 = vmatpush3.bf16.msra.mxu1 %v3902_v39 }
 0x1d3   : > { %3502 = vmatprep.subr.bf16.mxu1 %v3904_v41 }
 0x1d5   : > { %3675 = vmatmul.mubr.bf16.gmra.mrb[36].mxu1 %v773_v31 }
 0x1d6   : > { %3503 = vmatpush3.bf16.msra.mxu1 %v3906_v43 }
 0x1d7   : > { %3504 = vmatprep.subr.bf16.mxu1 %v3908_v45 }
 0x1da   : > { %3505 = vmatpush3.bf16.msra.mxu1 %v3910_v47 }
 0x1db   : > { %3506 = vmatprep.subr.bf16.mxu1 %v3912_v49 }
 0x1de   : > { %3507 = vmatpush3.bf16.msra.mxu1 %v3914_v51 }
 0x1df   : > { %3508 = vmatprep.subr.bf16.mxu1 %v3916_v54 }
 0x1e2   : > { %3509 = vmatpush3.bf16.msra.mxu1 %v3918_v56 }
 0x1e3   : > { %3510 = vmatprep.subr.bf16.mxu1 %v3920_v61 }
 0x1e6   : > { %3511 = vmatpush3.bf16.msra.mxu1 %v3922_v2 }
 0x1e7   : > { %3512 = vmatprep.subr.bf16.mxu1 %v3924_v4 }
 0x1ea   : > { %3513 = vmatpush3.bf16.msra.mxu1 %v3925_v5 }
 0x1eb   : > { %3578 = vmatprep.subr.bf16.mxu1 %v3928_v8 }
 0x260   : > { %v3302_v9 = vpop.f32.mrb[0].mxu1 }
 0x261   : > { %v3303_v13 = vpop.f32.mrb[1].mxu1 }
 0x262   : > { %v3304_v14 = vadd.f32 %v3303_v13, %v3302_v9  ;;  %v3305_v16 = vpop.f32.mrb[2].mxu1 }
 0x263   : > { %v3342_v17 = vpop.f32.mrb[8].mxu0  ;;  %v3306_v19 = vpop.f32.mrb[3].mxu1 }
 0x264   : > { %v1431_v21 = vadd.f32 %v3304_v14, %v3115_v11  ;;  %v3307_v22 = vadd.f32 %v3306_v19, %v3305_v16  ;;  %v3343_v24 = vpop.f32.mrb[9].mxu0 }
 0x265   : > { %v3344_v25 = vadd.f32 %v3343_v24, %v3342_v17  ;;  %v3345_v27 = vpop.f32.mrb[10].mxu0 }
 0x266   : > { %v1434_v28 = vadd.f32 %v3307_v22, %v3115_v11  ;;  %v3346_v18 = vpop.f32.mrb[11].mxu0 }
 0x267   : > { %v1496_v29 = vadd.f32 %v3344_v25, %v1431_v21  ;;  %v3347_v30 = vadd.f32 %v3346_v18, %v3345_v27 }
 0x268   : > { %v3308_v0 = vpop.f32.mrb[4].mxu1 }
 0x269   : > { %v1499_v32 = vadd.f32 %v3347_v30, %v1434_v28  ;;  %v3309_v57 = vpop.f32.mrb[5].mxu1 }
 0x26a   : > { %v3310_v60 = vadd.f32 %v3309_v57, %v3308_v0  ;;  %v3311_v1 = vpop.f32.mrb[6].mxu1 }
 0x26b   : > { %v3348_v20 = vpop.f32.mrb[12].mxu0  ;;  %v3312_v33 = vpop.f32.mrb[7].mxu1 }
 0x26c   : > { %v1439_v53 = vadd.f32 %v3310_v60, %v3115_v11  ;;  %v3313_v59 = vadd.f32 %v3312_v33, %v3311_v1  ;;  %v3349_v62 = vpop.f32.mrb[13].mxu0 }
 0x26d   : > { %v3350_v26 = vadd.f32 %v3349_v62, %v3348_v20  ;;  %v3351_v10 = vpop.f32.mrb[14].mxu0 }
 0x26e   : > { %v1442_v15 = vadd.f32 %v3313_v59, %v3115_v11  ;;  %v3352_v31 = vpop.f32.mrb[15].mxu0 }
 0x26f   : > { %v1504_v34 = vadd.f32 %v3350_v26, %v1439_v53  ;;  %v3353_v35 = vadd.f32 %v3352_v31, %v3351_v10 }
 0x270   : > { %v3314_v6 = vpop.f32.mrb[8].mxu1 }
 0x271   : > { %v1507_v12 = vadd.f32 %v3353_v35, %v1442_v15  ;;  %v3315_v23 = vpop.f32.mrb[9].mxu1 }
 0x272   : > { %v3316_v36 = vadd.f32 %v3315_v23, %v3314_v6  ;;  %v3317_v37 = vpop.f32.mrb[10].mxu1 }
 0x273   : > { %v3354_v38 = vpop.f32.mrb[16].mxu0  ;;  %v3318_v39 = vpop.f32.mrb[11].mxu1 }
 0x274   : > { %v1447_v40 = vadd.f32 %v3316_v36, %v3115_v11  ;;  %v3319_v41 = vadd.f32 %v3318_v39, %v3317_v37  ;;  %v3355_v42 = vpop.f32.mrb[17].mxu0 }
 0x275   : > { %v3356_v43 = vadd.f32 %v3355_v42, %v3354_v38  ;;  %v3357_v44 = vpop.f32.mrb[18].mxu0 }
 0x276   : > { %v1450_v45 = vadd.f32 %v3319_v41, %v3115_v11  ;;  %v3358_v46 = vpop.f32.mrb[19].mxu0 }
 0x277   : > { %v1512_v47 = vadd.f32 %v3356_v43, %v1447_v40  ;;  %v3359_v48 = vadd.f32 %v3358_v46, %v3357_v44 }
 0x278   : > { %v3320_v49 = vpop.f32.mrb[12].mxu1 }
 0x279   : > { %v1515_v50 = vadd.f32 %v3359_v48, %v1450_v45  ;;  %v3321_v51 = vpop.f32.mrb[13].mxu1 }
 0x27a   : > { %v3322_v52 = vadd.f32 %v3321_v51, %v3320_v49  ;;  %v3323_v54 = vpop.f32.mrb[14].mxu1 }
 0x27b   : > { %v3360_v55 = vpop.f32.mrb[20].mxu0  ;;  %v3324_v56 = vpop.f32.mrb[15].mxu1 }
 0x27c   : > { %v1455_v58 = vadd.f32 %v3322_v52, %v3115_v11  ;;  %v3325_v61 = vadd.f32 %v3324_v56, %v3323_v54  ;;  %v3361_v63 = vpop.f32.mrb[21].mxu0 }
 0x27d   : > { %v3362_v2 = vadd.f32 %v3361_v63, %v3360_v55  ;;  %v3363_v3 = vpop.f32.mrb[22].mxu0 }
 0x27e   : > { %v1458_v4 = vadd.f32 %v3325_v61, %v3115_v11  ;;  %v3364_v5 = vpop.f32.mrb[23].mxu0 }
 0x27f   : > { %v1520_v7 = vadd.f32 %v3362_v2, %v1455_v58  ;;  %v3365_v8 = vadd.f32 %v3364_v5, %v3363_v3 }
 0x280   : > { %v3382_v9 = vpop.f32.mrb[16].mxu1 }
 0x281   : > { %v1523_v13 = vadd.f32 %v3365_v8, %v1458_v4  ;;  %v3383_v14 = vpop.f32.mrb[17].mxu1 }
 0x282   : > { %v3384_v16 = vadd.f32 %v3383_v14, %v3382_v9  ;;  %v3385_v17 = vpop.f32.mrb[18].mxu1 }
 0x283   : > { %v3422_v19 = vpop.f32.mrb[24].mxu0  ;;  %v3386_v21 = vpop.f32.mrb[19].mxu1 }
 0x284   : > { %v1561_v22 = vadd.f32 %v3384_v16, %v1496_v29  ;;  %v3387_v24 = vadd.f32 %v3386_v21, %v3385_v17  ;;  %v3423_v25 = vpop.f32.mrb[25].mxu0 }
 0x285   : > { %v3424_v27 = vadd.f32 %v3423_v25, %v3422_v19  ;;  %v3425_v28 = vpop.f32.mrb[26].mxu0 }
 0x286   : > { %v1564_v18 = vadd.f32 %v3387_v24, %v1499_v32  ;;  %v3426_v30 = vpop.f32.mrb[27].mxu0 }
 0x287   : > { %v3427_v0 = vadd.f32 %v3426_v30, %v3425_v28  ;;  %v1626_v57 = vadd.f32 %v3424_v27, %v1561_v22  ;;  %v1754_v28 = vld [vmem:[#allocation2 + $0x1] sm:$0xff] }
 0x288   : > { %v3388_v11 = vpop.f32.mrb[20].mxu1 }
 0x289   : > { %v3389_v60 = vpop.f32.mrb[21].mxu1  ;;  %v1629_v1 = vadd.f32 %v3427_v0, %v1564_v18 }
 0x28a   : > { %v3390_v20 = vadd.f32 %v3389_v60, %v3388_v11  ;;  %v3391_v33 = vpop.f32.mrb[22].mxu1 }
 0x28b   : > { %v3428_v53 = vpop.f32.mrb[28].mxu0  ;;  %v3392_v59 = vpop.f32.mrb[23].mxu1 }
 0x28c   : > { %v1569_v62 = vadd.f32 %v3390_v20, %v1504_v34  ;;  %v3393_v26 = vadd.f32 %v3392_v59, %v3391_v33  ;;  %v3429_v10 = vpop.f32.mrb[29].mxu0 }
 0x28d   : > { %v3430_v15 = vadd.f32 %v3429_v10, %v3428_v53  ;;  %v3431_v29 = vpop.f32.mrb[30].mxu0 }
 0x28e   : > { %v1572_v31 = vadd.f32 %v3393_v26, %v1507_v12  ;;  %v3432_v35 = vpop.f32.mrb[31].mxu0 }
 0x28f   : > { %v3433_v6 = vadd.f32 %v3432_v35, %v3431_v29  ;;  %v1634_v23 = vadd.f32 %v3430_v15, %v1569_v62  ;;  %v1738_v15 = vld [vmem:[#allocation2] sm:$0xff] }
 0x290   : > { %v3394_v32 = vpop.f32.mrb[24].mxu1 }
 0x291   : > { %v3395_v36 = vpop.f32.mrb[25].mxu1  ;;  %v1637_v37 = vadd.f32 %v3433_v6, %v1572_v31 }
 0x292   : > { %v3396_v38 = vadd.f32 %v3395_v36, %v3394_v32  ;;  %v3397_v39 = vpop.f32.mrb[26].mxu1 }
 0x293   : > { %v3434_v40 = vpop.f32.mrb[32].mxu0  ;;  %v3398_v41 = vpop.f32.mrb[27].mxu1 }
 0x294   : > { %v1577_v42 = vadd.f32 %v3396_v38, %v1512_v47  ;;  %v3399_v43 = vadd.f32 %v3398_v41, %v3397_v39  ;;  %v3435_v44 = vpop.f32.mrb[33].mxu0  ;;  %v3929_v39 = vld [vmem:[#allocation10 + $0x148] sm:$0xff]  }
 0x295   : > { %v3436_v45 = vadd.f32 %v3435_v44, %v3434_v40  ;;  %v3437_v34 = vpop.f32.mrb[34].mxu0 }
 0x296   : > { %v1580_v46 = vadd.f32 %v3399_v43, %v1515_v50  ;;  %v3438_v48 = vpop.f32.mrb[35].mxu0 }
 0x297   : > { %v3439_v49 = vadd.f32 %v3438_v48, %v3437_v34  ;;  %v1642_v51 = vadd.f32 %v3436_v45, %v1577_v42  ;;  %v3930_v45 = vld [vmem:[#allocation10 + $0x180] sm:$0xff]  }
 0x298   : > { %v3400_v12 = vpop.f32.mrb[28].mxu1 }
 0x299   : > { %v3401_v52 = vpop.f32.mrb[29].mxu1  ;;  %v1645_v54 = vadd.f32 %v3439_v49, %v1580_v46  ;;  %v3931_v49 = vld [vmem:[#allocation10 + $0x108] sm:$0xff]  }
 0x29a   : > { %v3402_v55 = vadd.f32 %v3401_v52, %v3400_v12  ;;  %v3403_v56 = vpop.f32.mrb[30].mxu1 }
 0x29b   : > { %v3440_v58 = vpop.f32.mrb[36].mxu0  ;;  %v3404_v61 = vpop.f32.mrb[31].mxu1 }
 0x29c   : > { %v1585_v63 = vadd.f32 %v3402_v55, %v1520_v7  ;;  %v3405_v2 = vadd.f32 %v3404_v61, %v3403_v56  ;;  %v3441_v3 = vpop.f32.mrb[37].mxu0  ;;  %v3934_v55 = vld [vmem:[#allocation10 + $0x188] sm:$0xff]   ;;  %v3935_v56 = vld [vmem:[#allocation10 + $0x110] sm:$0xff]  }
 0x29d   : > { %v3442_v4 = vadd.f32 %v3441_v3, %v3440_v58  ;;  %v3443_v47 = vpop.f32.mrb[38].mxu0 }
 0x29e   : > { %v1588_v5 = vadd.f32 %v3405_v2, %v1523_v13  ;;  %v3444_v8 = vpop.f32.mrb[39].mxu0  ;;  %v3937_v2 = vld [vmem:[#allocation10 + $0x158] sm:$0xff]  }
 0x29f   : > { %v3445_v9 = vadd.f32 %v3444_v8, %v3443_v47  ;;  %v1650_v14 = vadd.f32 %v3442_v4, %v1585_v63  ;;  %v3936_v63 = vld [vmem:[#allocation10 + $0x1d0] sm:$0xff]  }
 0x2a0   : > { %v3672_v50 = vpop.f32.mrb[32].mxu1  ;;  %v3938_v47 = vld [vmem:[#allocation10 + $0x190] sm:$0xff]  }
 0x2a1   : > { %v1699_v16 = vadd.f32 %v3672_v50, %v1634_v23  ;;  %v1690_v17 = vpop.f32.mrb[33].mxu1  ;;  %v1653_v19 = vadd.f32 %v3445_v9, %v1588_v5  ;;  %v3927_v23 = vld [vmem:[#allocation10 + $0x100] sm:$0xff]   ;;  %v3939_v9 = vld [vmem:[#allocation10 + $0x118] sm:$0xff]  }
 0x2a2   : > { %v1691_v21 = vadd.f32 %v1690_v17, %v1626_v57  ;;  %v3673_v22 = vpop.f32.mrb[34].mxu1  ;;  %v3942_v17 = vld [vmem:[#allocation10 + $0x198] sm:$0xff]  }
 0x2a3   : > { %v4626_v24 = vmax.f32 %v1699_v16, 0.0  ;;  %v1702_v25 = vadd.f32 %v3673_v22, %v1637_v37  ;;  %v1693_v27 = vpop.f32.mrb[35].mxu1  ;;  %v1770_v37 = vld [vmem:[#allocation2 + $0x2] sm:$0xff] }
 0x2a4   : > { %v4628_v7 = vmax.f32 %v1691_v21, 0.0  ;;  %v1694_v18 = vadd.f32 %v1693_v27, %v1629_v1  ;;  %v3941_v16 = vld [vmem:[#allocation10 + $0x160] sm:$0xff]   ;;  %v3945_v27 = vld [vmem:[#allocation10 + $0x168] sm:$0xff]  }
 0x2a5   : > { %1732 = vst [vmem:[#allocation2 + $0x31] sm:$0xff] %v4626_v24  ;;  %v4631_v13 = vmax.f32 %v1702_v25, 0.0  ;;  %v3944_v25 = vld [vmem:[#allocation10 + $0x1e0] sm:$0xff]  }
 0x2a6   : > { %1730 = vst [vmem:[#allocation2 + $0x11] sm:$0xff] %v4628_v7  ;;  %v4634_v30 = vmax.f32 %v1694_v18, 0.0  ;;  %v1762_v0 = vpack.c.bf16 %v4628_v7, %v1754_v28 }
 0x2a7   : > { %1733 = vst [vmem:[#allocation2 + $0x41] sm:$0xff] %v4631_v13  ;;  %v1811_v57 = vpack.c.bf16 %v4631_v13, %v4626_v24 }
 0x2a8   : > { %1731 = vst [vmem:[#allocation2 + $0x21] sm:$0xff] %v4634_v30  ;;  %v3676_v11 = vpop.f32.mrb[36].mxu1  ;;  %2532 = vmatprep.mubr.bf16.mxu0 %v1762_v0  ;;  %v4643_v60 = vpack.c.bf16 %v4626_v24, %v4634_v30  ;;  %v1810_v1 = vpack.c.bf16 %v4634_v30, %v4628_v7  ;;  %v3946_v0 = vld [vmem:[#allocation10 + $0x1a0] sm:$0xff]  }
 0x2a9   : > { %v1715_v20 = vadd.f32 %v3676_v11, %v1650_v14  ;;  %v1706_v33 = vpop.f32.mrb[37].mxu1  ;;  %v3940_v14 = vld [vmem:[#allocation10 + $0x1d8] sm:$0xff]   ;;  %v3962_v7 = vld [vmem:[#allocation10 + $0x220] sm:$0xff]  }
 0x2aa   : > { %v1707_v53 = vadd.f32 %v1706_v33, %v1642_v51  ;;  %v3677_v59 = vpop.f32.mrb[38].mxu1  ;;  %v3932_v51 = vld [vmem:[#allocation10 + $0x1c8] sm:$0xff]  }
 0x2ab   : > { %v4647_v62 = vmax.f32 %v1715_v20, 0.0  ;;  %v1718_v26 = vadd.f32 %v3677_v59, %v1653_v19  ;;  %v1709_v10 = vpop.f32.mrb[39].mxu1  ;;  %v3943_v19 = vld [vmem:[#allocation10 + $0x120] sm:$0xff]   ;;  %v3947_v33 = vld [vmem:[#allocation10 + $0x128] sm:$0xff]  }
 0x2ac   : > { %v4649_v29 = vmax.f32 %v1707_v53, 0.0  ;;  %v1710_v31 = vadd.f32 %v1709_v10, %v1645_v54  ;;  %v1788_v48 = vld [vmem:[#allocation2 + $0x30] sm:$0xff]  ;;  %v3948_v53 = vld [vmem:[#allocation10 + $0x1e8] sm:$0xff]  }
 0x2ad   : > { %1736 = vst [vmem:[#allocation2 + $0x71] sm:$0xff] %v4647_v62  ;;  %v4652_v35 = vmax.f32 %v1718_v26, 0.0  ;;  %v1739_v6 = vld [vmem:[#allocation2 + $0x10] sm:$0xff]  ;;  %v3950_v10 = vld [vmem:[#allocation10 + $0x1a8] sm:$0xff]  }
 0x2ae   : > { %1734 = vst [vmem:[#allocation2 + $0x51] sm:$0xff] %v4649_v29  ;;  %v4655_v32 = vmax.f32 %v1710_v31, 0.0  ;;  %v1746_v36 = vpack.c.bf16 %v1739_v6, %v1738_v15  ;;  %v4657_v38 = vld [vmem:[#allocation2 + $0x12] sm:$0xff]  ;;  %v4661_v40 = vpack.c.bf16 %v4649_v29, %v4631_v13  ;;  %v1789_v42 = vld [vmem:[#allocation2 + $0x40] sm:$0xff] }
 0x2af   : > { %1737 = vst [vmem:[#allocation2 + $0x81] sm:$0xff] %v4652_v35  ;;  %v1787_v41 = vld [vmem:[#allocation2 + $0x20] sm:$0xff]  ;;  %v1813_v43 = vpack.c.bf16 %v4652_v35, %v4647_v62  ;;  %v1778_v46 = vpack.c.bf16 %v4657_v38, %v1770_v37  ;;  %v1795_v52 = vpack.c.bf16 %v1789_v42, %v1788_v48  ;;  %v3933_v54 = vld [vmem:[#allocation10 + $0x150] sm:$0xff]  }
 0x2b0   : > { %1735 = vst [vmem:[#allocation2 + $0x61] sm:$0xff] %v4655_v32  ;;  %2533 = vmatmul.mubr.bf16.vlgmr.msra.gmra.mrb[40].mxu0 %v1746_v36  ;;  %v1794_v44 = vpack.c.bf16 %v1787_v41, %v1739_v6  ;;  %v4669_v34 = vpack.c.bf16 %v4647_v62, %v4655_v32  ;;  %v1812_v12 = vpack.c.bf16 %v4655_v32, %v4649_v29  ;;  %v4677_v61 = vld [vmem:[#allocation2 + $0x22] sm:$0xff]  ;;  %v4680_v4 = vld [vmem:[#allocation2 + $0x32] sm:$0xff] }
 0x2b1   : > { %3539 = vmatpush3.bf16.msra.mxu0 %v3927_v23  ;;  %2540 = vmatprep.mubr.bf16.mxu0 %v4643_v60  ;;  %v4675_v58 = vpack.c.bf16 %v1788_v48, %v1787_v41  ;;  %v4685_v5 = vpack.c.bf16 %v4680_v4, %v4677_v61  ;;  %v1774_v18 = vld [vmem:[#allocation2 + $0x42] sm:$0xff]  ;;  %v3949_v26 = vld [vmem:[#allocation10 + $0x170] sm:$0xff]   ;;  %v3953_v36 = vld [vmem:[#allocation10 + $0x178] sm:$0xff]   ;;  %v1826_v37 = vpack.c.bf16 %v4677_v61, %v4657_v38 }
 0x2b2   : > { %2597 = vmatprep.mubr.bf16.mxu1 %v1794_v44  ;;  %3540 = vmatprep.subr.bf16.mxu0 %v3929_v39  ;;  %v3951_v15 = vld [vmem:[#allocation10 + $0x130] sm:$0xff]   ;;  %v3955_v44 = vld [vmem:[#allocation10 + $0x138] sm:$0xff]   ;;  %v3959_v48 = vld [vmem:[#allocation10 + $0x208] sm:$0xff]  }
 0x2b3   : > { %2598 = vmatmul.mubr.bf16.vlgmr.msra.gmra.mrb[40].mxu1 %v1778_v46  ;;  %v3952_v23 = vld [vmem:[#allocation10 + $0x1f0] sm:$0xff]   ;;  %v3958_v46 = vld [vmem:[#allocation10 + $0x200] sm:$0xff]   ;;  %v3957_v38 = vld [vmem:[#allocation10 + $0x1b8] sm:$0xff]  }
 0x2b4   : > { %2605 = vmatprep.mubr.bf16.mxu1 %v1795_v52  ;;  %3579 = vmatpush3.bf16.msra.mxu1 %v3930_v45  ;;  %v1792_v20 = vld [vmem:[#allocation2 + $0x70] sm:$0xff]  ;;  %v3956_v45 = vld [vmem:[#allocation10 + $0x1f8] sm:$0xff]  }
 0x2b5   : > { %3541 = vmatpush3.bf16.msra.mxu0 %v3931_v49  ;;  %3580 = vmatprep.subr.bf16.mxu1 %v3932_v51  ;;  %v1790_v8 = vld [vmem:[#allocation2 + $0x50] sm:$0xff]  ;;  %v1827_v49 = vpack.c.bf16 %v1774_v18, %v4680_v4 }
 0x2b6   : > { %3542 = vmatprep.subr.bf16.mxu0 %v3933_v54  ;;  %v4688_v21 = vpack.c.bf16 %v1790_v8, %v1789_v42  ;;  %v4690_v22 = vld [vmem:[#allocation2 + $0x52] sm:$0xff]  ;;  %v4692_v28 = vld [vmem:[#allocation2 + $0x80] sm:$0xff] }
 0x2b7   : > { %v1791_v3 = vld [vmem:[#allocation2 + $0x60] sm:$0xff]  ;;  %v4697_v11 = vpack.c.bf16 %v4690_v22, %v1774_v18  ;;  %v1797_v59 = vpack.c.bf16 %v4692_v28, %v1792_v20  ;;  %v1777_v39 = vld [vmem:[#allocation2 + $0x72] sm:$0xff] }
 0x2b8   : > { %3581 = vmatpush3.bf16.msra.mxu1 %v3934_v55  ;;  %2541 = vmatmul.mubr.bf16.gmra.mrb[44].mxu0 %v4675_v58  ;;  %v1796_v50 = vpack.c.bf16 %v1791_v3, %v1790_v8  ;;  %v4701_v31 = vpack.c.bf16 %v1792_v20, %v1791_v3  ;;  %v1776_v6 = vld [vmem:[#allocation2 + $0x62] sm:$0xff]  ;;  %v3954_v41 = vld [vmem:[#allocation10 + $0x1b0] sm:$0xff]  }
 0x2b9   : > { %3543 = vmatpush3.bf16.msra.mxu0 %v3935_v56  ;;  %2548 = vmatprep.mubr.bf16.mxu0 %v4661_v40  ;;  %v4706_v42 = vpack.c.bf16 %v1777_v39, %v1776_v6  ;;  %v3960_v51 = vld [vmem:[#allocation10 + $0x210] sm:$0xff]   ;;  %v1828_v52 = vpack.c.bf16 %v1776_v6, %v4690_v22  ;;  %v1825_v30 = vld [vmem:[#allocation2 + $0x82] sm:$0xff] }
 0x2ba   : > { %3582 = vmatprep.subr.bf16.mxu1 %v3936_v63  ;;  %3544 = vmatprep.subr.bf16.mxu0 %v3937_v2  ;;  %v1857_v54 = vld [vmem:[#allocation2 + $0x91] sm:$0xff] }
 0x2bb   : > { %2606 = vmatmul.mubr.bf16.gmra.mrb[44].mxu1 %v4685_v5  ;;  %v1861_v24 = vpack.c.bf16 %v1857_v54, %v4652_v35  ;;  %v3964_v13 = vld [vmem:[#allocation10 + $0x230] sm:$0xff]  }
 0x2bc   : > { %2613 = vmatprep.mubr.bf16.mxu1 %v1796_v50  ;;  %3583 = vmatpush3.bf16.msra.mxu1 %v3938_v47  ;;  %v1873_v62 = vld [vmem:[#allocation2 + $0x92] sm:$0xff] }
 0x2bd   : > { %3545 = vmatpush3.bf16.msra.mxu0 %v3939_v9  ;;  %3584 = vmatprep.subr.bf16.mxu1 %v3940_v14  ;;  %v1877_v35 = vpack.c.bf16 %v1873_v62, %v1825_v30 }
 0x2be   : > { %3546 = vmatprep.subr.bf16.mxu0 %v3941_v16 }
 0x2c0   : > { %3585 = vmatpush3.bf16.msra.mxu1 %v3942_v17  ;;  %2549 = vmatmul.mubr.bf16.gmra.mrb[48].mxu0 %v4688_v21 }
 0x2c1   : > { %3547 = vmatpush3.bf16.msra.mxu0 %v3943_v19  ;;  %2556 = vmatprep.mubr.bf16.mxu0 %v4669_v34 }
 0x2c2   : > { %3586 = vmatprep.subr.bf16.mxu1 %v3944_v25  ;;  %3548 = vmatprep.subr.bf16.mxu0 %v3945_v27 }
 0x2c3   : > { %2614 = vmatmul.mubr.bf16.gmra.mrb[48].mxu1 %v4697_v11 }
 0x2c4   : > { %2621 = vmatprep.mubr.bf16.mxu1 %v1797_v59  ;;  %3587 = vmatpush3.bf16.msra.mxu1 %v3946_v0 }
 0x2c5   : > { %3549 = vmatpush3.bf16.msra.mxu0 %v3947_v33  ;;  %3588 = vmatprep.subr.bf16.mxu1 %v3948_v53 }
 0x2c6   : > { %3550 = vmatprep.subr.bf16.mxu0 %v3949_v26 }
 0x2c8   : > { %3589 = vmatpush3.bf16.msra.mxu1 %v3950_v10  ;;  %2557 = vmatmul.mubr.bf16.gmra.mrb[52].mxu0 %v4701_v31 }
 0x2c9   : > { %3551 = vmatpush3.bf16.msra.mxu0 %v3951_v15  ;;  %2662 = vmatprep.mubr.bf16.mxu0 %v1826_v37 }
 0x2ca   : > { %3590 = vmatprep.subr.bf16.mxu1 %v3952_v23  ;;  %3552 = vmatprep.subr.bf16.mxu0 %v3953_v36 }
 0x2cb   : > { %2622 = vmatmul.mubr.bf16.gmra.mrb[52].mxu1 %v4706_v42 }
 0x2cc   : > { %3591 = vmatpush3.bf16.msra.mxu1 %v3954_v41  ;;  %2727 = vmatprep.mubr.bf16.mxu1 %v4643_v60  ;;  %v3961_v60 = vld [vmem:[#allocation10 + $0x218] sm:$0xff]  }
 0x2cd   : > { %3553 = vmatpush3.bf16.msra.mxu0 %v3955_v44  ;;  %3592 = vmatprep.subr.bf16.mxu1 %v3956_v45 }
 0x2ce   : > { %3678 = vmatprep.subr.bf16.mxu0 %v3958_v46 }
 0x2d0   : > { %3593 = vmatpush3.bf16.msra.mxu1 %v3957_v38  ;;  %2663 = vmatmul.mubr.bf16.vlgmr.msra.gmra.mrb[56].mxu0 %v1810_v1  ;;  %v3963_v1 = vld [vmem:[#allocation10 + $0x228] sm:$0xff]  }
 0x2d1   : > { %3679 = vmatpush3.bf16.msra.mxu0 %v3958_v46  ;;  %2670 = vmatprep.mubr.bf16.mxu0 %v1827_v49 }
 0x2d2   : > { %3702 = vmatprep.subr.bf16.mxu1 %v3958_v46  ;;  %3680 = vmatprep.subr.bf16.mxu0 %v3959_v48 }
 0x2d3   : > { %2728 = vmatmul.mubr.bf16.vlgmr.msra.gmra.mrb[56].mxu1 %v4675_v58 }
 0x2d4   : > { %2735 = vmatprep.mubr.bf16.mxu1 %v4661_v40  ;;  %3710 = vmatpush3.bf16.msra.mxu1 %v3958_v46  ;;  %v1829_v40 = vpack.c.bf16 %v1825_v30, %v1777_v39 }
 0x2d5   : > { %3681 = vmatpush3.bf16.msra.mxu0 %v3959_v48  ;;  %3703 = vmatprep.subr.bf16.mxu1 %v3959_v48 }
 0x2d6   : > { %3682 = vmatprep.subr.bf16.mxu0 %v3960_v51 }
 0x2d8   : > { %3711 = vmatpush3.bf16.msra.mxu1 %v3959_v48  ;;  %2671 = vmatmul.mubr.bf16.gmra.mrb[60].mxu0 %v1811_v57  ;;  %v1841_v57 = vld [vmem:[#allocation2 + $0x90] sm:$0xff] }
 0x2d9   : > { %3683 = vmatpush3.bf16.msra.mxu0 %v3960_v51  ;;  %2678 = vmatprep.mubr.bf16.mxu0 %v1828_v52  ;;  %v1845_v29 = vpack.c.bf16 %v1841_v57, %v4692_v28 }
 0x2da   : > { %3704 = vmatprep.subr.bf16.mxu1 %v3960_v51  ;;  %3684 = vmatprep.subr.bf16.mxu0 %v3961_v60 }
 0x2db   : > { %2736 = vmatmul.mubr.bf16.gmra.mrb[60].mxu1 %v4688_v21 }
 0x2dc   : > { %2743 = vmatprep.mubr.bf16.mxu1 %v4669_v34  ;;  %3712 = vmatpush3.bf16.msra.mxu1 %v3960_v51  ;;  %v3965_v34 = vld [vmem:[#allocation10 + $0x238] sm:$0xff]  }
 0x2dd   : > { %3685 = vmatpush3.bf16.msra.mxu0 %v3961_v60  ;;  %3705 = vmatprep.subr.bf16.mxu1 %v3961_v60 }
 0x2de   : > { %3686 = vmatprep.subr.bf16.mxu0 %v3962_v7 }
 0x2e0   : > { %3713 = vmatpush3.bf16.msra.mxu1 %v3961_v60  ;;  %2679 = vmatmul.mubr.bf16.gmra.mrb[64].mxu0 %v1812_v12 }
 0x2e1   : > { %3687 = vmatpush3.bf16.msra.mxu0 %v3962_v7  ;;  %2686 = vmatprep.mubr.bf16.mxu0 %v1829_v40 }
 0x2e2   : > { %3706 = vmatprep.subr.bf16.mxu1 %v3962_v7  ;;  %3688 = vmatprep.subr.bf16.mxu0 %v3963_v1 }
 0x2e3   : > { %2744 = vmatmul.mubr.bf16.gmra.mrb[64].mxu1 %v4701_v31 }
 0x2e4   : > { %2751 = vmatprep.mubr.bf16.mxu1 %v1861_v24  ;;  %3714 = vmatpush3.bf16.msra.mxu1 %v3962_v7 }
 0x2e5   : > { %3689 = vmatpush3.bf16.msra.mxu0 %v3963_v1  ;;  %3707 = vmatprep.subr.bf16.mxu1 %v3963_v1 }
 0x2e6   : > { %3690 = vmatprep.subr.bf16.mxu0 %v3964_v13 }
 0x2e8   : > { %3715 = vmatpush3.bf16.msra.mxu1 %v3963_v1  ;;  %2687 = vmatmul.mubr.bf16.gmra.mrb[68].mxu0 %v1813_v43 }
 0x2e9   : > { %3691 = vmatpush3.bf16.msra.mxu0 %v3964_v13  ;;  %3694 = vmatprep.mubr.bf16.mxu0 %v4685_v5 }
 0x2ea   : > { %3708 = vmatprep.subr.bf16.mxu1 %v3964_v13  ;;  %3692 = vmatprep.subr.bf16.mxu0 %v3965_v34 }
 0x2eb   : > { %2752 = vmatmul.mubr.bf16.gmra.mrb[68].mxu1 %v1845_v29 }
 0x2ec   : > { %3716 = vmatpush3.bf16.msra.mxu1 %v3964_v13  ;;  %3698 = vmatprep.mubr.bf16.mxu1 %v4706_v42 }
 0x2ed   : > { %3693 = vmatpush3.bf16.msra.mxu0 %v3965_v34  ;;  %3709 = vmatprep.subr.bf16.mxu1 %v3965_v34 }
 0x2f0   : > { %3717 = vmatpush3.bf16.msra.mxu1 %v3965_v34  ;;  %3695 = vmatmul.mubr.bf16.vlgmr.msra.gmra.mrb[72].mxu0 %v4697_v11 }
 0x2f3   : > { %3699 = vmatmul.mubr.bf16.vlgmr.msra.gmra.mrb[72].mxu1 %v1877_v35 }
 0x2f4   : > { %4093 = shalt.err (!%p4090_p4)
}
 0x2f5   : > { %s4094_s27 = scalar_lea.hbm %s4743_s23, 1024  ;;  %s4098_s29 = scalar_lea.hbm %s4866_s7, 2048 }
 0x2f6   : > { %p4095_p9 = scmp.ne.s32.totalorder %s4743_s23, %s4094_s27  ;;  %p4099_p8 = scmp.lt.u32.totalorder %s4743_s23, %s4866_s7 }
 0x2f7   : > { %p4100_p13 = scmp.lt.u32.totalorder %s4098_s29, %s4094_s27  ;;  %p4102_p10 = scmp.lt.u32.totalorder %s4094_s27, %s4743_s23 }
 0x2f8   : > { %p4096_p0 = pnand %p4095_p9, %p4434_p5 }
 0x2f9   : > { %p4101_p6 = por %p4100_p13, %p4099_p8 }
 0x2fa   : > { %p4097_p11 = pneg %p4096_p0 }
 0x2fb   : > { %p4103_p3 = por %p4102_p10, %p4101_p6 }
 0x2fd   : > { %p4104_p7 = pnand %p4103_p3, %p4097_p11 }
 0x2ff   : > { %4107 = shalt.err (!%p4104_p7)
}
 0x300   : > { %s4224_s19 = smov 128   ;;  %s4225_s17 = smov 8   ;;  %v3188_v43 = vld [vmem:[%s4865_s6] ss:$0 sm:$0xff] }
 0x301   : > { %3732 = dma.vmem_to_hbm [thread:$0]  (%p4434_p5), %s4736_s9, 1024, %s4743_s23, %s2870_s21, %s4224_s19, %s4224_s19, %s4225_s17  }
 0x302   : > { %s405_s9 = scalar_lea.vmem [#allocation13], %s3099_s15  ;;  %s2874_s21 = sand.u32 1, %s4299_s13  }
 0x303   : > { %s2909_s23 = sshll.u32 %s405_s9, 4  ;;  %s4785_s22 = scalar_lea.hbm %s4867_s8, %s3272_s20  ;;  %s4778_s23 = int_to_ptr.vmem [resolvable:$true] %s2909_s23 }
 0x304   : > { %s4787_s29 = scalar_lea.sflag [#allocation14], %s2874_s21  ;;  %s4108_s24 = scalar_lea.vmem %s4778_s23, 1024 }
 0x305   : > { %p4109_p12 = scmp.ne.s32.totalorder %s4778_s23, %s4108_s24  ;;  %s4226_s28 = smov [#allocation13]  }
 0x306   : > { %s4112_s26 = sshll.u32 %s4226_s28, 4  ;;  %s4113_s26 = int_to_ptr.vmem [resolvable:$false] %s4112_s26 }
 0x307   : > { %p4110_p1 = pnand %p4109_p12, %p4434_p5  ;;  %s4114_s20 = scalar_lea.vmem %s4113_s26, 2048 }
 0x308   : > { %p4115_p4 = scmp.lt.s32.totalorder %s4778_s23, %s4113_s26  ;;  %p4116_p9 = scmp.lt.s32.totalorder %s4114_s20, %s4108_s24 }
 0x309   : > { %p4111_p2 = pneg %p4110_p1 }
 0x30a   : > { %p4117_p0 = por %p4116_p9, %p4115_p4 }
 0x30c   : > { %p4118_p11 = pnand %p4117_p0, %p4111_p2 }
 0x383   : > { %v3474_v32 = vpop.f32.mrb[40].mxu0 }
 0x384   : > { %v3475_v12 = vpop.f32.mrb[41].mxu0 }
 0x385   : > { %v3476_v55 = vadd.f32 %v3475_v12, %v3474_v32  ;;  %v3477_v56 = vpop.f32.mrb[42].mxu0 }
 0x386   : > { %v3514_v58 = vpop.f32.mrb[40].mxu1  ;;  %v3478_v61 = vpop.f32.mrb[43].mxu0 }
 0x387   : > { %v2535_v63 = vadd.f32 %v3476_v55, %v3188_v43  ;;  %v3479_v2 = vadd.f32 %v3478_v61, %v3477_v56  ;;  %v3515_v3 = vpop.f32.mrb[41].mxu1 }
 0x388   : > { %v3516_v4 = vadd.f32 %v3515_v3, %v3514_v58  ;;  %v3517_v47 = vpop.f32.mrb[42].mxu1 }
 0x389   : > { %v2538_v5 = vadd.f32 %v3479_v2, %v3188_v43  ;;  %v3518_v8 = vpop.f32.mrb[43].mxu1 }
 0x38a   : > { %v2600_v9 = vadd.f32 %v3516_v4, %v2535_v63  ;;  %v3519_v14 = vadd.f32 %v3518_v8, %v3517_v47 }
 0x38b   : > { %v3480_v50 = vpop.f32.mrb[44].mxu0 }
 0x38c   : > { %v2603_v16 = vadd.f32 %v3519_v14, %v2538_v5  ;;  %v3481_v17 = vpop.f32.mrb[45].mxu0 }
 0x38d   : > { %v3482_v19 = vadd.f32 %v3481_v17, %v3480_v50  ;;  %v3483_v21 = vpop.f32.mrb[46].mxu0 }
 0x38e   : > { %v3520_v22 = vpop.f32.mrb[44].mxu1  ;;  %v3484_v25 = vpop.f32.mrb[47].mxu0 }
 0x38f   : > { %v2543_v27 = vadd.f32 %v3482_v19, %v3188_v43  ;;  %v3485_v28 = vadd.f32 %v3484_v25, %v3483_v21  ;;  %v3521_v18 = vpop.f32.mrb[45].mxu1 }
 0x390   : > { %v3522_v0 = vadd.f32 %v3521_v18, %v3520_v22  ;;  %v3523_v11 = vpop.f32.mrb[46].mxu1 }
 0x391   : > { %v2546_v20 = vadd.f32 %v3485_v28, %v3188_v43  ;;  %v3524_v33 = vpop.f32.mrb[47].mxu1 }
 0x392   : > { %v2608_v53 = vadd.f32 %v3522_v0, %v2543_v27  ;;  %v3525_v59 = vadd.f32 %v3524_v33, %v3523_v11 }
 0x393   : > { %v3486_v26 = vpop.f32.mrb[48].mxu0 }
 0x394   : > { %v2611_v10 = vadd.f32 %v3525_v59, %v2546_v20  ;;  %v3487_v15 = vpop.f32.mrb[49].mxu0 }
 0x395   : > { %v3488_v31 = vadd.f32 %v3487_v15, %v3486_v26  ;;  %v3489_v6 = vpop.f32.mrb[50].mxu0 }
 0x396   : > { %v3526_v23 = vpop.f32.mrb[48].mxu1  ;;  %v3490_v36 = vpop.f32.mrb[51].mxu0 }
 0x397   : > { %v2551_v37 = vadd.f32 %v3488_v31, %v3188_v43  ;;  %v3491_v39 = vadd.f32 %v3490_v36, %v3489_v6  ;;  %v3527_v41 = vpop.f32.mrb[49].mxu1 }
 0x398   : > { %v3528_v42 = vadd.f32 %v3527_v41, %v3526_v23  ;;  %v3529_v44 = vpop.f32.mrb[50].mxu1 }
 0x399   : > { %v2554_v45 = vadd.f32 %v3491_v39, %v3188_v43  ;;  %v3530_v46 = vpop.f32.mrb[51].mxu1 }
 0x39a   : > { %v2616_v38 = vadd.f32 %v3528_v42, %v2551_v37  ;;  %v3531_v48 = vadd.f32 %v3530_v46, %v3529_v44 }
 0x39b   : > { %v3492_v49 = vpop.f32.mrb[52].mxu0 }
 0x39c   : > { %v2619_v51 = vadd.f32 %v3531_v48, %v2554_v45  ;;  %v3493_v60 = vpop.f32.mrb[53].mxu0 }
 0x39d   : > { %v3494_v52 = vadd.f32 %v3493_v60, %v3492_v49  ;;  %v3495_v7 = vpop.f32.mrb[54].mxu0 }
 0x39e   : > { %v3532_v30 = vpop.f32.mrb[52].mxu1  ;;  %v3496_v1 = vpop.f32.mrb[55].mxu0 }
 0x39f   : > { %v2559_v40 = vadd.f32 %v3494_v52, %v3188_v43  ;;  %v3497_v54 = vadd.f32 %v3496_v1, %v3495_v7  ;;  %v3533_v24 = vpop.f32.mrb[53].mxu1 }
 0x3a0   : > { %v3534_v13 = vadd.f32 %v3533_v24, %v3532_v30  ;;  %v3535_v57 = vpop.f32.mrb[54].mxu1 }
 0x3a1   : > { %v2562_v34 = vadd.f32 %v3497_v54, %v3188_v43  ;;  %v3536_v29 = vpop.f32.mrb[55].mxu1 }
 0x3a2   : > { %v2624_v62 = vadd.f32 %v3534_v13, %v2559_v40  ;;  %v3537_v35 = vadd.f32 %v3536_v29, %v3535_v57 }
 0x3a3   : > { %v3554_v32 = vpop.f32.mrb[56].mxu0 }
 0x3a4   : > { %v2627_v12 = vadd.f32 %v3537_v35, %v2562_v34  ;;  %v3555_v55 = vpop.f32.mrb[57].mxu0 }
 0x3a5   : > { %v3556_v56 = vadd.f32 %v3555_v55, %v3554_v32  ;;  %v3557_v58 = vpop.f32.mrb[58].mxu0 }
 0x3a6   : > { %v3594_v61 = vpop.f32.mrb[56].mxu1  ;;  %v3558_v63 = vpop.f32.mrb[59].mxu0 }
 0x3a7   : > { %v2665_v2 = vadd.f32 %v3556_v56, %v2600_v9  ;;  %v3559_v3 = vadd.f32 %v3558_v63, %v3557_v58  ;;  %v3595_v4 = vpop.f32.mrb[57].mxu1 }
 0x3a8   : > { %v3596_v47 = vadd.f32 %v3595_v4, %v3594_v61  ;;  %v3597_v5 = vpop.f32.mrb[58].mxu1 }
 0x3a9   : > { %v2668_v8 = vadd.f32 %v3559_v3, %v2603_v16  ;;  %v3598_v14 = vpop.f32.mrb[59].mxu1 }
 0x3aa   : > { %v3599_v50 = vadd.f32 %v3598_v14, %v3597_v5  ;;  %v2730_v17 = vadd.f32 %v3596_v47, %v2665_v2 }
 0x3ab   : > { %v3560_v43 = vpop.f32.mrb[60].mxu0 }
 0x3ac   : > { %v3561_v19 = vpop.f32.mrb[61].mxu0  ;;  %v2733_v21 = vadd.f32 %v3599_v50, %v2668_v8 }
 0x3ad   : > { %v3562_v22 = vadd.f32 %v3561_v19, %v3560_v43  ;;  %v3563_v25 = vpop.f32.mrb[62].mxu0 }
 0x3ae   : > { %v3600_v27 = vpop.f32.mrb[60].mxu1  ;;  %v3564_v28 = vpop.f32.mrb[63].mxu0 }
 0x3af   : > { %v2673_v18 = vadd.f32 %v3562_v22, %v2608_v53  ;;  %v3565_v0 = vadd.f32 %v3564_v28, %v3563_v25  ;;  %v3601_v11 = vpop.f32.mrb[61].mxu1 }
 0x3b0   : > { %v3602_v20 = vadd.f32 %v3601_v11, %v3600_v27  ;;  %v3603_v9 = vpop.f32.mrb[62].mxu1 }
 0x3b1   : > { %v2676_v33 = vadd.f32 %v3565_v0, %v2611_v10  ;;  %v3604_v59 = vpop.f32.mrb[63].mxu1 }
 0x3b2   : > { %v3605_v26 = vadd.f32 %v3604_v59, %v3603_v9  ;;  %v2738_v15 = vadd.f32 %v3602_v20, %v2673_v18 }
 0x3b3   : > { %v3566_v16 = vpop.f32.mrb[64].mxu0 }
 0x3b4   : > { %v3567_v31 = vpop.f32.mrb[65].mxu0  ;;  %v2741_v6 = vadd.f32 %v3605_v26, %v2676_v33 }
 0x3b5   : > { %v3568_v23 = vadd.f32 %v3567_v31, %v3566_v16  ;;  %v3569_v36 = vpop.f32.mrb[66].mxu0 }
 0x3b6   : > { %v3606_v37 = vpop.f32.mrb[64].mxu1  ;;  %v3570_v39 = vpop.f32.mrb[67].mxu0 }
 0x3b7   : > { %v2681_v41 = vadd.f32 %v3568_v23, %v2616_v38  ;;  %v3571_v42 = vadd.f32 %v3570_v39, %v3569_v36  ;;  %v3607_v44 = vpop.f32.mrb[65].mxu1 }
 0x3b8   : > { %v3608_v45 = vadd.f32 %v3607_v44, %v3606_v37  ;;  %v3609_v53 = vpop.f32.mrb[66].mxu1 }
 0x3b9   : > { %v2684_v46 = vadd.f32 %v3571_v42, %v2619_v51  ;;  %v3610_v48 = vpop.f32.mrb[67].mxu1 }
 0x3ba   : > { %v3611_v49 = vadd.f32 %v3610_v48, %v3609_v53  ;;  %v2746_v60 = vadd.f32 %v3608_v45, %v2681_v41 }
 0x3bb   : > { %v3572_v10 = vpop.f32.mrb[68].mxu0 }
 0x3bc   : > { %v3573_v52 = vpop.f32.mrb[69].mxu0  ;;  %v2749_v7 = vadd.f32 %v3611_v49, %v2684_v46 }
 0x3bd   : > { %v3574_v30 = vadd.f32 %v3573_v52, %v3572_v10  ;;  %v3575_v1 = vpop.f32.mrb[70].mxu0 }
 0x3be   : > { %v3612_v40 = vpop.f32.mrb[68].mxu1  ;;  %v3576_v54 = vpop.f32.mrb[71].mxu0 }
 0x3bf   : > { %v2689_v24 = vadd.f32 %v3574_v30, %v2624_v62  ;;  %v3577_v13 = vadd.f32 %v3576_v54, %v3575_v1  ;;  %v3613_v57 = vpop.f32.mrb[69].mxu1 }
 0x3c0   : > { %v3614_v38 = vadd.f32 %v3613_v57, %v3612_v40  ;;  %v3615_v34 = vpop.f32.mrb[70].mxu1 }
 0x3c1   : > { %v2692_v29 = vadd.f32 %v3577_v13, %v2627_v12  ;;  %v3616_v35 = vpop.f32.mrb[71].mxu1 }
 0x3c2   : > { %v3617_v32 = vadd.f32 %v3616_v35, %v3615_v34  ;;  %v2754_v51 = vadd.f32 %v3614_v38, %v2689_v24 }
 0x3c3   : > { %v3696_v55 = vpop.f32.mrb[72].mxu0 }
 0x3c4   : > { %v2803_v56 = vadd.f32 %v3696_v55, %v2738_v15  ;;  %v2794_v58 = vpop.f32.mrb[73].mxu0  ;;  %v2757_v61 = vadd.f32 %v3617_v32, %v2692_v29 }
 0x3c5   : > { %v2795_v63 = vadd.f32 %v2794_v58, %v2730_v17  ;;  %v3697_v2 = vpop.f32.mrb[74].mxu0 }
 0x3c6   : > { %2827 = vst [vmem:[%s405_s9 + $0x10] sm:$0xff] %v2803_v56  ;;  %v2806_v62 = vadd.f32 %v3697_v2, %v2741_v6  ;;  %v3700_v3 = vpop.f32.mrb[72].mxu1  ;;  %v2797_v4 = vpop.f32.mrb[75].mxu0  ;;  %v2849_v25 = vmul.f32 %v2803_v56, %v2803_v56 }
 0x3c7   : > { %2825 = vst [vmem:[%s405_s9] sm:$0xff] %v2795_v63  ;;  %v2819_v47 = vadd.f32 %v3700_v3, %v2754_v51  ;;  %v2798_v12 = vadd.f32 %v2797_v4, %v2733_v21  ;;  %v2810_v5 = vpop.f32.mrb[73].mxu1  ;;  %v2847_v50 = vmul.f32 %v2795_v63, %v2795_v63 }
 0x3c8   : > { %2828 = vst [vmem:[%s405_s9 + $0x18] sm:$0xff] %v2806_v62  ;;  %v2811_v8 = vadd.f32 %v2810_v5, %v2746_v60  ;;  %v3701_v14 = vpop.f32.mrb[74].mxu1  ;;  %v2850_v18 = vmul.f32 %v2806_v62, %v2806_v62 }
 0x3c9   : > { %2831 = vst [vmem:[%s405_s9 + $0x30] sm:$0xff] %v2819_v47  ;;  %2826 = vst [vmem:[%s405_s9 + $0x8] sm:$0xff] %v2798_v12  ;;  %v2833_v17 = vadd.f32 %v2798_v12, %v2795_v63  ;;  %v2848_v43 = vmul.f32 %v2798_v12, %v2798_v12  ;;  %v2822_v19 = vadd.f32 %v3701_v14, %v2757_v61  ;;  %v2813_v22 = vpop.f32.mrb[75].mxu1 }
 0x3ca   : > { %2829 = vst [vmem:[%s405_s9 + $0x20] sm:$0xff] %v2811_v8  ;;  %v2814_v21 = vadd.f32 %v2813_v22, %v2749_v7 }
 0x3cb   : > { %v2834_v27 = vadd.f32 %v2833_v17, %v2803_v56  ;;  %v2855_v28 = vadd.f32 %v2848_v43, %v2847_v50  ;;  %2832 = vst [vmem:[%s405_s9 + $0x38] sm:$0xff] %v2822_v19 }
 0x3cc   : > { %2830 = vst [vmem:[%s405_s9 + $0x28] sm:$0xff] %v2814_v21 }
 0x3cd   : > { %v2856_v0 = vadd.f32 %v2855_v28, %v2849_v25  ;;  %v2835_v11 = vadd.f32 %v2834_v27, %v2806_v62 }
 0x3ce   : > { %4121 = shalt.err (!%p4118_p11)
}
 0x3cf   : > { %s4122_s25 = scalar_lea.hbm %s4785_s22, 1024  ;;  %s4126_s15 = scalar_lea.hbm %s4867_s8, 2048 }
 0x3d0   : > { %p4123_p8 = scmp.ne.s32.totalorder %s4785_s22, %s4122_s25  ;;  %p4127_p10 = scmp.lt.u32.totalorder %s4785_s22, %s4867_s8 }
 0x3d1   : > { %p4128_p3 = scmp.lt.u32.totalorder %s4126_s15, %s4122_s25  ;;  %p4130_p12 = scmp.lt.u32.totalorder %s4122_s25, %s4785_s22 }
 0x3d2   : > { %p4124_p13 = pnand %p4123_p8, %p4434_p5 }
 0x3d3   : > { %p4129_p7 = por %p4128_p3, %p4127_p10 }
 0x3d4   : > { %p4125_p6 = pneg %p4124_p13 }
 0x3d5   : > { %p4131_p1 = por %p4130_p12, %p4129_p7 }
 0x3d7   : > { %p4132_p2 = pnand %p4131_p1, %p4125_p6 }
 0x3d9   : > { %4135 = shalt.err (!%p4132_p2)
}
 0x3da   : > { %3733 = dma.vmem_to_hbm [thread:$0]  (%p4434_p5), %s4778_s23, 1024, %s4785_s22, %s4787_s29, %s4224_s19, %s4224_s19, %s4225_s17   ;;  %v2836_v20 = vadd.f32 %v2835_v11, %v2811_v8  ;;  %v2851_v9 = vmul.f32 %v2811_v8, %v2811_v8  ;;  %v2857_v33 = vadd.f32 %v2856_v0, %v2850_v18  ;;  %v2852_v15 = vmul.f32 %v2814_v21, %v2814_v21 }
 0x3db   : > { %v2853_v16 = vmul.f32 %v2819_v47, %v2819_v47  ;;  %v2854_v23 = vmul.f32 %v2822_v19, %v2822_v19  ;;  %s3101_s24 = sshll.u32 %s4485_s30, 1  ;;  %s3268_s19 = sshll.u32 %s4299_s13, 5 }
 0x3dc   : > { %v2858_v59 = vadd.f32 %v2857_v33, %v2851_v9  ;;  %v2837_v26 = vadd.f32 %v2836_v20, %v2814_v21  ;;  %s412_s17 = scalar_lea.vmem [#allocation15], %s3101_s24  ;;  %s4893_s20 = sld [smem:[#allocation23_spill]] }
 0x3dd   : > { %s2925_s23 = sshll.u32 %s412_s17, 4  ;;  %s4227_s9 = smov [#allocation15]   ;;  %s2926_s23 = int_to_ptr.vmem [resolvable:$true] %s2925_s23 }
 0x3de   : > { %v2838_v31 = vadd.f32 %v2837_v26, %v2819_v47  ;;  %v2859_v6 = vadd.f32 %v2858_v59, %v2852_v15  ;;  %s4136_s30 = scalar_lea.vmem %s2926_s23, 32  ;;  %s4140_s13 = sshll.u32 %s4227_s9, 4  ;;  %s4141_s13 = int_to_ptr.vmem [resolvable:$false] %s4140_s13 }
 0x3df   : > { %p4137_p4 = scmp.ne.s32.totalorder %s2926_s23, %s4136_s30  ;;  %s4142_s21 = scalar_lea.vmem %s4141_s13, 64 }
 0x3e0   : > { %v2839_v36 = vadd.f32 %v2838_v31, %v2822_v19  ;;  %v2860_v37 = vadd.f32 %v2859_v6, %v2853_v16  ;;  %p4143_p11 = scmp.lt.s32.totalorder %s2926_s23, %s4141_s13  ;;  %p4144_p8 = scmp.lt.s32.totalorder %s4142_s21, %s4136_s30 }
 0x3e1   : > { %p4138_p9 = pnand %p4137_p4, %p4434_p5 }
 0x3e2   : > { %v2840_v39 = vrot.slane %v2839_v36, 4  ;;  %v2861_v41 = vadd.f32 %v2860_v37, %v2854_v23  ;;  %s4819_s25 = scalar_lea.hbm %s4893_s20, %s3268_s19  ;;  %p4145_p13 = por %p4144_p8, %p4143_p11 }
 0x3e3   : > { %p4139_p0 = pneg %p4138_p9 }
 0x3e4   : > { %v2841_v42 = vadd.f32 %v2840_v39, %v2839_v36  ;;  %v2862_v44 = vrot.slane %v2861_v41, 4 }
 0x3e5   : > { %p4146_p6 = pnand %p4145_p13, %p4139_p0 }
 0x3e6   : > { %v2842_v45 = vrot.slane %v2841_v42, 2  ;;  %v2863_v53 = vadd.f32 %v2862_v44, %v2861_v41 }
 0x3e8   : > { %v2843_v46 = vadd.f32 %v2842_v45, %v2841_v42  ;;  %v2864_v48 = vrot.slane %v2863_v53, 2 }
 0x3ea   : > { %v2844_v49 = vrot.slane %v2843_v46, 1  ;;  %v2865_v60 = vadd.f32 %v2864_v48, %v2863_v53 }
 0x3ec   : > { %v2845_v10 = vadd.f32 %v2844_v49, %v2843_v46  ;;  %v2866_v52 = vrot.slane %v2865_v60, 1 }
 0x3ee   : > { %2846 = vst [vmem:[%s412_s17] sm:$0x1] %v2845_v10  ;;  %v2867_v7 = vadd.f32 %v2866_v52, %v2865_v60 }
 0x3f0   : > { %2868 = vst [vmem:[%s412_s17 + $0x1] sm:$0x1] %v2867_v7 }
 0x3f1   : > { %4149 = shalt.err (!%p4146_p6)
}
 0x3f2   : > { %s4150_s15 = scalar_lea.hbm %s4819_s25, 32  ;;  %s4154_s24 = scalar_lea.hbm %s4893_s20, 64 }
 0x3f3   : > { %p4151_p10 = scmp.ne.s32.totalorder %s4819_s25, %s4150_s15  ;;  %p4155_p12 = scmp.lt.u32.totalorder %s4819_s25, %s4893_s20 }
 0x3f4   : > { %p4156_p1 = scmp.lt.u32.totalorder %s4154_s24, %s4150_s15  ;;  %p4158_p4 = scmp.lt.u32.totalorder %s4150_s15, %s4819_s25 }
 0x3f5   : > { %p4152_p3 = pnand %p4151_p10, %p4434_p5 }
 0x3f6   : > { %p4157_p2 = por %p4156_p1, %p4155_p12 }
 0x3f7   : > { %p4153_p7 = pneg %p4152_p3 }
 0x3f8   : > { %p4159_p9 = por %p4158_p4, %p4157_p2 }
 0x3fa   : > { %p4160_p0 = pnand %p4159_p9, %p4153_p7 }
 0x3fc   : > { %4163 = shalt.err (!%p4160_p0)
}
 0x3fd   : > { %3734 = dma.vmem_to_hbm [thread:$0]  (%p4434_p5), %s2926_s23, 32, %s4819_s25, %s4787_s29  }
 0x3fe PF: > { %s4894_s22 = sld [smem:[#allocation21_spill]]  ;;  %s4895_s26 = sld [smem:[#allocation22_spill]] }
 0x3ff   : > { %p4897_p8 = scmp.ge.s32.totalorder %s4214_s12, 2 }
 0x404   : > { %s2937_s30 = sand.u32 1, %s4894_s22   ;;  %p4896_p11 = scmp.ne.s32.totalorder %s4895_s26, 0 }
 0x405   : > { %s2938_s9 = scalar_lea.sflag [#allocation6], %s2937_s30 }
 0x406   : > { %p3753_p13 = pnand %p4897_p8, %p4896_p11 }
 0x408   : > { %4193 = dma.done.wait (!%p3753_p13), %s2938_s9, 1024  }
 0x409   : > { %4195 = vsyncadd (!%p3753_p13), %s2938_s9, 4294966272  ;;  %s4898_s13 = sadd.s32 4294967294, %s4214_s12  }
 0x40a   : > { %s2946_s21 = sand.u32 1, %s4898_s13  }
 0x40b   : > { %s2947_s15 = scalar_lea.sflag [#allocation14], %s2946_s21 }
 0x40c   : > { %4197 = dma.done.wait (!%p3753_p13), %s2947_s15, 1056  }
 0x40d   : > { %4199 = vsyncadd (!%p3753_p13), %s2947_s15, 4294966240  ;;  %p28_p5 = scmp.ge.s32.totalorder %s4420_s18, 4   ;;  %s4899_s30 = smov %s4206_s10 }
 0x40e   : > { %s4900_s10 = smov %s4210_s11  ;;  %s4901_s11 = smov %s4430_s14 }
 0x40f   : > { %s4902_s12 = smov %s4420_s18  ;;  %30 = sbr.rel (!%p28_p5) target bundleno = 11 (0xb), region = 140 }
 0x416   :  { %2961 = vsyncpa [#allocation5], 1 }
 0x417   :  { %2963 = vsyncpa [#allocation5 + $0x1], 1 }
 0x418   :  { %2964 = vsyncpa [#allocation8], 1 }
 0x419   :  { %2965 = vsyncpa [#allocation11], 1 }
 0x41a   :  { %2966 = vsyncpa [#allocation6], 1 }
 0x41b   :  { %2968 = vsyncpa [#allocation6 + $0x1], 1 }
 0x41c   :  { %2969 = vsyncpa [#allocation14], 1 }
 0x41d   :  { %2971 = vsyncpa [#allocation14 + $0x1], 1 }

</bundles_post_ra>
